<compile_context>
chip_gen: v7x
topology: tpu7x:2x2x1
jax: 0.10.0
libtpu: 0.0.40
codegen_flags: <defaults>
</compile_context>

<pallas_src>
import functools

import jax
import jax.numpy as jnp
from jax.experimental import pallas as pl
from jax.experimental.pallas import tpu as pltpu

GEM_EPS = 1e-6        # GeM.__init__(eps=1e-06) -> clamp min
GEM_CLAMP_MAX = 1e4   # gem() clamp max=10000.0
L2_EPS = 1e-10        # L2Norm eps
POOL_FLOOR = 1e-35    # guard: keep log(pooled) finite if eps**p underflows


@functools.partial(jax.jit, static_argnames=("tile_h",))
def gemnet_forward(x_nchw, conv_w_oihw, conv_b, p, tile_h=None):
    """GeMNet forward with a synthetic 3x3-conv feature extractor.

    x_nchw:      (N, Cin, H, W)    float32 (PyTorch NCHW convention)
    conv_w_oihw: (Cout, Cin, 3, 3) float32 (PyTorch OIHW conv weight)
    conv_b:      (Cout,)           float32
    p:           (1,)              float32 (GeM learnable p)
    returns:     (N, Cout)         float32 L2-normalized descriptors
    """
    N, Cin, H, W = x_nchw.shape
    Cout = conv_w_oihw.shape[0]
    HW = H * W
    Coutp = ((Cout + 127) // 128) * 128            # lane-dense output channels

    # ---- spatial row tile selection ----
    if tile_h is None:
        # Bound the dominant (tile_h*W, Coutp) f32 intermediate to ~4 MiB and
        # target <= 2048 matmul rows per grid step.
        rows_budget = max(1, (4 << 20) // (Coutp * 4))
        target_rows = min(2048, rows_budget)
        tile_h = max(1, min(H, target_rows // max(W, 1)))
    tile_h = max(1, min(int(tile_h), H))
    # Snap to a divisor of H; prefer sublane-aligned matmul M (tile_h*W % 8 == 0).
    divisors = [d for d in range(1, tile_h + 1) if H % d == 0]
    aligned = [d for d in divisors if (d * W) % 8 == 0]
    tile_h = max(aligned) if aligned else max(divisors)
    nt = H // tile_h                               # row tiles per image

    # ---- glue: NCHW -> NHWC, zero-pad spatial (3x3 SAME), cast bf16 ----
    x = jnp.transpose(x_nchw, (0, 2, 3, 1)).astype(jnp.bfloat16)
    xp = jnp.pad(x, ((0, 0), (1, 1), (1, 1), (0, 0)))
    # Overlapping row windows (2-row halo per tile, ~(1+2/tile_h)x bytes vs the
    # 9x of im2col) -> (N, nt, tile_h+2, W+2, Cin).
    if nt == 1:
        xw = xp[:, None]
    else:
        xw = jnp.stack(
            [xp[:, i * tile_h:i * tile_h + tile_h + 2] for i in range(nt)],
            axis=1)

    # Conv weight OIHW -> (tap=kh*3+kw, Cin, Coutp) bf16, zero-padded channels.
    w = jnp.transpose(conv_w_oihw, (2, 3, 1, 0)).reshape(9, Cin, Cout)
    w = jnp.pad(w, ((0, 0), (0, 0), (0, Coutp - Cout))).astype(jnp.bfloat16)
    bias = jnp.pad(conv_b, (0, Coutp - Cout)).reshape(1, Coutp).astype(jnp.float32)
    p = p.astype(jnp.float32)

    def kernel(p_ref, xw_ref, w_ref, b_ref, out_ref, acc_ref):
        # p_ref:   (1,)                   f32  SMEM (GeM p)
        # xw_ref:  (tile_h+2, W+2, Cin)   bf16 VMEM (padded row window, streamed)
        # w_ref:   (9, Cin, Coutp)        bf16 VMEM (resident conv weights)
        # b_ref:   (1, Coutp)             f32  VMEM (resident bias)
        # out_ref: (1, Coutp)             f32  VMEM (descriptor, written at last tile)
        # acc_ref: (1, Coutp)             f32  VMEM scratch (running sum of x**p)
        t = pl.program_id(1)

        @pl.when(t == 0)
        def _init():
            acc_ref[...] = jnp.zeros_like(acc_ref)

        rows = tile_h * W
        # --- cnn: 3x3 conv on this row tile as 9 shifted-slice matmuls ---
        # Bias is the initial value of the f32 accumulator (saves a full-tile add).
        feats = jnp.broadcast_to(b_ref[...], (rows, Coutp))
        for kh in range(3):
            for kw in range(3):
                xs = xw_ref[kh:kh + tile_h, kw:kw + W, :]     # (tile_h, W, Cin) bf16
                xs = xs.reshape(rows, Cin)
                feats = feats + jnp.dot(
                    xs, w_ref[kh * 3 + kw],
                    preferred_element_type=jnp.float32)        # f32 accumulate

        # --- head: ReLU + GeM partial pow-sum over this row tile ---
        # ReLU folds into the clamp: clip(x, eps, 1e4) == clip(relu(x), eps, 1e4).
        pc = jnp.maximum(p_ref[0], 0.1)                        # clamp(p, min=0.1)
        xc = jnp.clip(feats, GEM_EPS, GEM_CLAMP_MAX)
        # TODO(synk): p is a learnable (non-integer) parameter, so x**p stays as
        # exp(p*log(x)) on the EUP; an integer-power VPU fast path would only be
        # valid if p were guaranteed integer.
        powed = jnp.exp(pc * jnp.log(xc))                      # x ** p
        acc_ref[...] += jnp.sum(powed, axis=0, keepdims=True)

        # --- finalize on the last row tile: mean, **(1/p), abs, L2 norm ---
        @pl.when(t == pl.num_programs(1) - 1)
        def _finalize():
            pooled = acc_ref[...] * (1.0 / float(HW))          # full-spatial avg pool
            pooled = jnp.maximum(pooled, POOL_FLOOR)
            g = jnp.abs(jnp.exp(jnp.log(pooled) / pc))         # |pooled ** (1/p)|
            ch = jax.lax.broadcasted_iota(jnp.int32, (1, Coutp), 1)
            g = jnp.where(ch < Cout, g, 0.0)                   # drop padded channels
            norm = jnp.sqrt(jnp.sum(g * g, axis=1, keepdims=True) + L2_EPS)
            out_ref[...] = g / norm

    out = pl.pallas_call(
        kernel,
        out_shape=jax.ShapeDtypeStruct((N, 1, Coutp), jnp.float32),
        grid_spec=pltpu.PrefetchScalarGridSpec(
            num_scalar_prefetch=0,
            grid=(N, nt),                    # batch (parallel), row tiles (reduction)
            in_specs=[
                pl.BlockSpec(memory_space=pltpu.MemorySpace.SMEM),        # p
                pl.BlockSpec((None, None, tile_h + 2, W + 2, Cin),        # x windows
                             lambda bi, ti: (bi, ti, 0, 0, 0)),
                pl.BlockSpec((9, Cin, Coutp), lambda bi, ti: (0, 0, 0)),  # weights
                pl.BlockSpec((1, Coutp), lambda bi, ti: (0, 0)),          # bias
            ],
            out_specs=pl.BlockSpec((None, 1, Coutp), lambda bi, ti: (bi, 0, 0)),
            scratch_shapes=[pltpu.VMEM((1, Coutp), jnp.float32)],
        ),
        compiler_params=pltpu.CompilerParams(
            dimension_semantics=("parallel", "arbitrary"),
            vmem_limit_bytes=32 * 1024 * 1024),
    )(p, xw, w, bias)

    return out.reshape(N, Coutp)[:, :Cout]


def _reference_forward(x_nchw, conv_w_oihw, conv_b, p):
    """Pure-JAX f32 reference mirroring the PyTorch module semantics."""
    y = jax.lax.conv_general_dilated(
        x_nchw, conv_w_oihw, window_strides=(1, 1), padding="SAME",
        dimension_numbers=("NCHW", "OIHW", "NCHW"))
    y = y + conv_b[None, :, None, None]
    y = jnp.maximum(y, 0.0)                                    # ReLU
    pc = jnp.maximum(p[0], 0.1)
    yc = jnp.clip(y, GEM_EPS, GEM_CLAMP_MAX)
    pooled = jnp.mean(yc ** pc, axis=(2, 3))                   # avg_pool2d full spatial
    g = jnp.abs(pooled ** (1.0 / pc))
    norm = jnp.sqrt(jnp.sum(g * g, axis=1, keepdims=True) + L2_EPS)
    return g / norm


if __name__ == "__main__":
    # Small deterministic shapes
    N, Cin, H, W, Cout = 2, 4, 16, 16, 32

    key = jax.random.PRNGKey(0)
    kx, kw, kb = jax.random.split(key, 3)
    x = jax.random.normal(kx, (N, Cin, H, W), dtype=jnp.float32)
    conv_w = jax.random.normal(kw, (Cout, Cin, 3, 3), dtype=jnp.float32) * 0.1
    conv_b = jax.random.normal(kb, (Cout,), dtype=jnp.float32) * 0.01
    p = jnp.array([5.0], dtype=jnp.float32)                    # GeM(5.0)

    # tile_h=8 -> 2 row tiles per image: exercises the accumulate/finalize path.
    out = gemnet_forward(x, conv_w, conv_b, p, tile_h=8)
    out = jax.block_until_ready(out)

    ref = jax.block_until_ready(_reference_forward(x, conv_w, conv_b, p))
    assert out.shape == (N, Cout), out.shape
    # bf16 MXU inputs (f32 accumulation) vs. pure-f32 reference -> looser tol.
    assert jnp.allclose(out, ref, atol=1e-2, rtol=1e-2), (
        float(jnp.max(jnp.abs(out - ref))))

    # Also exercise the default (single-tile) tiling path.
    out2 = jax.block_until_ready(gemnet_forward(x, conv_w, conv_b, p))
    assert jnp.allclose(out2, ref, atol=1e-2, rtol=1e-2), (
        float(jnp.max(jnp.abs(out2 - ref))))

    print("KERNEL_OK")
</pallas_src>

<mosaic_0001>
module attributes {stable_mosaic.version = 11 : i64} {
  func.func @kernel(%arg0: i32, %arg1: i32, %arg2: memref<1xf32, #tpu.memory_space<smem>>, %arg3: memref<1x1x10x18x4xbf16, #tpu.memory_space<vmem>>, %arg4: memref<9x4x128xbf16, #tpu.memory_space<vmem>>, %arg5: memref<1x128xf32, #tpu.memory_space<vmem>>, %arg6: memref<1x1x128xf32, #tpu.memory_space<vmem>>, %arg7: memref<1x128xf32, #tpu.memory_space<vmem>>) attributes {dimension_semantics = [#tpu.dimension_semantics<parallel>, #tpu.dimension_semantics<arbitrary>], iteration_bounds = array<i64: 2, 2>, scalar_prefetch = 0 : i64, scratch_operands = 1 : i64, tpu.core_type = #tpu.core_type<tc>, window_params = [{transform_indices = @transform_0, window_bounds = array<i64: 1>}, {transform_indices = @transform_1, window_bounds = array<i64: 1, 1, 10, 18, 4>}, {pipeline_mode = #tpu.pipeline_mode<synchronous>, transform_indices = @transform_2, window_bounds = array<i64: 9, 4, 128>}, {pipeline_mode = #tpu.pipeline_mode<synchronous>, transform_indices = @transform_3, window_bounds = array<i64: 1, 128>}, {transform_indices = @transform_4, window_bounds = array<i64: 1, 1, 128>}]} {
    %c0_i32 = arith.constant 0 : i32
    %0 = arith.cmpi eq, %arg1, %c0_i32 : i32
    %1 = arith.extui %0 : i1 to i32
    %c0_i32_0 = arith.constant 0 : i32
    %2 = arith.cmpi ne, %1, %c0_i32_0 : i32
    scf.if %2 {
      %cst_84 = arith.constant 0.000000e+00 : f32
      %87 = vector.broadcast %cst_84 : f32 to vector<1x128xf32>
      %c0_85 = arith.constant 0 : index
      %c0_86 = arith.constant 0 : index
      %88 = vector.load %arg7[%c0_85, %c0_86] : memref<1x128xf32, #tpu.memory_space<vmem>>, vector<1x128xf32>
      tpu.vector_store %arg7[%c0_85, %c0_86], %87 {strides = array<i32>} : memref<1x128xf32, #tpu.memory_space<vmem>>, vector<1x128xf32>,
    } else {
    }
    %c0 = arith.constant 0 : index
    %c0_1 = arith.constant 0 : index
    %3 = vector.load %arg5[%c0, %c0_1] : memref<1x128xf32, #tpu.memory_space<vmem>>, vector<1x128xf32>
    %4 = vector.shape_cast %3 : vector<1x128xf32> to vector<1x128xf32>
    %5 = vector.broadcast %4 : vector<1x128xf32> to vector<128x128xf32>
    %c0_2 = arith.constant 0 : index
    %c0_3 = arith.constant 0 : index
    %c0_4 = arith.constant 0 : index
    %c0_5 = arith.constant 0 : index
    %c0_6 = arith.constant 0 : index
    %6 = vector.load %arg3[%c0_2, %c0_3, %c0_4, %c0_5, %c0_6] : memref<1x1x10x18x4xbf16, #tpu.memory_space<vmem>>, vector<1x1x8x16x4xbf16>
    %7 = vector.shape_cast %6 : vector<1x1x8x16x4xbf16> to vector<8x16x4xbf16>
    %8 = vector.shape_cast %7 : vector<8x16x4xbf16> to vector<128x4xbf16>
    %c0_7 = arith.constant 0 : index
    %c0_8 = arith.constant 0 : index
    %c0_9 = arith.constant 0 : index
    %9 = vector.load %arg4[%c0_7, %c0_8, %c0_9] : memref<9x4x128xbf16, #tpu.memory_space<vmem>>, vector<1x4x128xbf16>
    %10 = vector.shape_cast %9 : vector<1x4x128xbf16> to vector<4x128xbf16>
    %cst = arith.constant dense<0.000000e+00> : vector<128x128xf32>
    %11 = tpu.matmul %8, %10, %cst {dimension_numbers = #tpu.dot_dimension_numbers<[1], [0], [0], [1], [0, 0, 1, 1], [], []>} : vector<128x4xbf16>, vector<4x128xbf16>, vector<128x128xf32> -> vector<128x128xf32>
    %12 = arith.addf %5, %11 : vector<128x128xf32>
    %c0_10 = arith.constant 0 : index
    %c0_11 = arith.constant 0 : index
    %c0_12 = arith.constant 0 : index
    %c1 = arith.constant 1 : index
    %c0_13 = arith.constant 0 : index
    %13 = vector.load %arg3[%c0_10, %c0_11, %c0_12, %c1, %c0_13] : memref<1x1x10x18x4xbf16, #tpu.memory_space<vmem>>, vector<1x1x8x16x4xbf16>
    %14 = vector.shape_cast %13 : vector<1x1x8x16x4xbf16> to vector<8x16x4xbf16>
    %15 = vector.shape_cast %14 : vector<8x16x4xbf16> to vector<128x4xbf16>
    %c1_14 = arith.constant 1 : index
    %c0_15 = arith.constant 0 : index
    %c0_16 = arith.constant 0 : index
    %16 = vector.load %arg4[%c1_14, %c0_15, %c0_16] : memref<9x4x128xbf16, #tpu.memory_space<vmem>>, vector<1x4x128xbf16>
    %17 = vector.shape_cast %16 : vector<1x4x128xbf16> to vector<4x128xbf16>
    %cst_17 = arith.constant dense<0.000000e+00> : vector<128x128xf32>
    %18 = tpu.matmul %15, %17, %cst_17 {dimension_numbers = #tpu.dot_dimension_numbers<[1], [0], [0], [1], [0, 0, 1, 1], [], []>} : vector<128x4xbf16>, vector<4x128xbf16>, vector<128x128xf32> -> vector<128x128xf32>
    %19 = arith.addf %12, %18 : vector<128x128xf32>
    %c0_18 = arith.constant 0 : index
    %c0_19 = arith.constant 0 : index
    %c0_20 = arith.constant 0 : index
    %c2 = arith.constant 2 : index
    %c0_21 = arith.constant 0 : index
    %20 = vector.load %arg3[%c0_18, %c0_19, %c0_20, %c2, %c0_21] : memref<1x1x10x18x4xbf16, #tpu.memory_space<vmem>>, vector<1x1x8x16x4xbf16>
    %21 = vector.shape_cast %20 : vector<1x1x8x16x4xbf16> to vector<8x16x4xbf16>
    %22 = vector.shape_cast %21 : vector<8x16x4xbf16> to vector<128x4xbf16>
    %c2_22 = arith.constant 2 : index
    %c0_23 = arith.constant 0 : index
    %c0_24 = arith.constant 0 : index
    %23 = vector.load %arg4[%c2_22, %c0_23, %c0_24] : memref<9x4x128xbf16, #tpu.memory_space<vmem>>, vector<1x4x128xbf16>
    %24 = vector.shape_cast %23 : vector<1x4x128xbf16> to vector<4x128xbf16>
    %cst_25 = arith.constant dense<0.000000e+00> : vector<128x128xf32>
    %25 = tpu.matmul %22, %24, %cst_25 {dimension_numbers = #tpu.dot_dimension_numbers<[1], [0], [0], [1], [0, 0, 1, 1], [], []>} : vector<128x4xbf16>, vector<4x128xbf16>, vector<128x128xf32> -> vector<128x128xf32>
    %26 = arith.addf %19, %25 : vector<128x128xf32>
    %c0_26 = arith.constant 0 : index
    %c0_27 = arith.constant 0 : index
    %c1_28 = arith.constant 1 : index
    %c0_29 = arith.constant 0 : index
    %c0_30 = arith.constant 0 : index
    %27 = vector.load %arg3[%c0_26, %c0_27, %c1_28, %c0_29, %c0_30] : memref<1x1x10x18x4xbf16, #tpu.memory_space<vmem>>, vector<1x1x8x16x4xbf16>
    %28 = vector.shape_cast %27 : vector<1x1x8x16x4xbf16> to vector<8x16x4xbf16>
    %29 = vector.shape_cast %28 : vector<8x16x4xbf16> to vector<128x4xbf16>
    %c3 = arith.constant 3 : index
    %c0_31 = arith.constant 0 : index
    %c0_32 = arith.constant 0 : index
    %30 = vector.load %arg4[%c3, %c0_31, %c0_32] : memref<9x4x128xbf16, #tpu.memory_space<vmem>>, vector<1x4x128xbf16>
    %31 = vector.shape_cast %30 : vector<1x4x128xbf16> to vector<4x128xbf16>
    %cst_33 = arith.constant dense<0.000000e+00> : vector<128x128xf32>
    %32 = tpu.matmul %29, %31, %cst_33 {dimension_numbers = #tpu.dot_dimension_numbers<[1], [0], [0], [1], [0, 0, 1, 1], [], []>} : vector<128x4xbf16>, vector<4x128xbf16>, vector<128x128xf32> -> vector<128x128xf32>
    %33 = arith.addf %26, %32 : vector<128x128xf32>
    %c0_34 = arith.constant 0 : index
    %c0_35 = arith.constant 0 : index
    %c1_36 = arith.constant 1 : index
    %c1_37 = arith.constant 1 : index
    %c0_38 = arith.constant 0 : index
    %34 = vector.load %arg3[%c0_34, %c0_35, %c1_36, %c1_37, %c0_38] : memref<1x1x10x18x4xbf16, #tpu.memory_space<vmem>>, vector<1x1x8x16x4xbf16>
    %35 = vector.shape_cast %34 : vector<1x1x8x16x4xbf16> to vector<8x16x4xbf16>
    %36 = vector.shape_cast %35 : vector<8x16x4xbf16> to vector<128x4xbf16>
    %c4 = arith.constant 4 : index
    %c0_39 = arith.constant 0 : index
    %c0_40 = arith.constant 0 : index
    %37 = vector.load %arg4[%c4, %c0_39, %c0_40] : memref<9x4x128xbf16, #tpu.memory_space<vmem>>, vector<1x4x128xbf16>
    %38 = vector.shape_cast %37 : vector<1x4x128xbf16> to vector<4x128xbf16>
    %cst_41 = arith.constant dense<0.000000e+00> : vector<128x128xf32>
    %39 = tpu.matmul %36, %38, %cst_41 {dimension_numbers = #tpu.dot_dimension_numbers<[1], [0], [0], [1], [0, 0, 1, 1], [], []>} : vector<128x4xbf16>, vector<4x128xbf16>, vector<128x128xf32> -> vector<128x128xf32>
    %40 = arith.addf %33, %39 : vector<128x128xf32>
    %c0_42 = arith.constant 0 : index
    %c0_43 = arith.constant 0 : index
    %c1_44 = arith.constant 1 : index
    %c2_45 = arith.constant 2 : index
    %c0_46 = arith.constant 0 : index
    %41 = vector.load %arg3[%c0_42, %c0_43, %c1_44, %c2_45, %c0_46] : memref<1x1x10x18x4xbf16, #tpu.memory_space<vmem>>, vector<1x1x8x16x4xbf16>
    %42 = vector.shape_cast %41 : vector<1x1x8x16x4xbf16> to vector<8x16x4xbf16>
    %43 = vector.shape_cast %42 : vector<8x16x4xbf16> to vector<128x4xbf16>
    %c5 = arith.constant 5 : index
    %c0_47 = arith.constant 0 : index
    %c0_48 = arith.constant 0 : index
    %44 = vector.load %arg4[%c5, %c0_47, %c0_48] : memref<9x4x128xbf16, #tpu.memory_space<vmem>>, vector<1x4x128xbf16>
    %45 = vector.shape_cast %44 : vector<1x4x128xbf16> to vector<4x128xbf16>
    %cst_49 = arith.constant dense<0.000000e+00> : vector<128x128xf32>
    %46 = tpu.matmul %43, %45, %cst_49 {dimension_numbers = #tpu.dot_dimension_numbers<[1], [0], [0], [1], [0, 0, 1, 1], [], []>} : vector<128x4xbf16>, vector<4x128xbf16>, vector<128x128xf32> -> vector<128x128xf32>
    %47 = arith.addf %40, %46 : vector<128x128xf32>
    %c0_50 = arith.constant 0 : index
    %c0_51 = arith.constant 0 : index
    %c2_52 = arith.constant 2 : index
    %c0_53 = arith.constant 0 : index
    %c0_54 = arith.constant 0 : index
    %48 = vector.load %arg3[%c0_50, %c0_51, %c2_52, %c0_53, %c0_54] : memref<1x1x10x18x4xbf16, #tpu.memory_space<vmem>>, vector<1x1x8x16x4xbf16>
    %49 = vector.shape_cast %48 : vector<1x1x8x16x4xbf16> to vector<8x16x4xbf16>
    %50 = vector.shape_cast %49 : vector<8x16x4xbf16> to vector<128x4xbf16>
    %c6 = arith.constant 6 : index
    %c0_55 = arith.constant 0 : index
    %c0_56 = arith.constant 0 : index
    %51 = vector.load %arg4[%c6, %c0_55, %c0_56] : memref<9x4x128xbf16, #tpu.memory_space<vmem>>, vector<1x4x128xbf16>
    %52 = vector.shape_cast %51 : vector<1x4x128xbf16> to vector<4x128xbf16>
    %cst_57 = arith.constant dense<0.000000e+00> : vector<128x128xf32>
    %53 = tpu.matmul %50, %52, %cst_57 {dimension_numbers = #tpu.dot_dimension_numbers<[1], [0], [0], [1], [0, 0, 1, 1], [], []>} : vector<128x4xbf16>, vector<4x128xbf16>, vector<128x128xf32> -> vector<128x128xf32>
    %54 = arith.addf %47, %53 : vector<128x128xf32>
    %c0_58 = arith.constant 0 : index
    %c0_59 = arith.constant 0 : index
    %c2_60 = arith.constant 2 : index
    %c1_61 = arith.constant 1 : index
    %c0_62 = arith.constant 0 : index
    %55 = vector.load %arg3[%c0_58, %c0_59, %c2_60, %c1_61, %c0_62] : memref<1x1x10x18x4xbf16, #tpu.memory_space<vmem>>, vector<1x1x8x16x4xbf16>
    %56 = vector.shape_cast %55 : vector<1x1x8x16x4xbf16> to vector<8x16x4xbf16>
    %57 = vector.shape_cast %56 : vector<8x16x4xbf16> to vector<128x4xbf16>
    %c7 = arith.constant 7 : index
    %c0_63 = arith.constant 0 : index
    %c0_64 = arith.constant 0 : index
    %58 = vector.load %arg4[%c7, %c0_63, %c0_64] : memref<9x4x128xbf16, #tpu.memory_space<vmem>>, vector<1x4x128xbf16>
    %59 = vector.shape_cast %58 : vector<1x4x128xbf16> to vector<4x128xbf16>
    %cst_65 = arith.constant dense<0.000000e+00> : vector<128x128xf32>
    %60 = tpu.matmul %57, %59, %cst_65 {dimension_numbers = #tpu.dot_dimension_numbers<[1], [0], [0], [1], [0, 0, 1, 1], [], []>} : vector<128x4xbf16>, vector<4x128xbf16>, vector<128x128xf32> -> vector<128x128xf32>
    %61 = arith.addf %54, %60 : vector<128x128xf32>
    %c0_66 = arith.constant 0 : index
    %c0_67 = arith.constant 0 : index
    %c2_68 = arith.constant 2 : index
    %c2_69 = arith.constant 2 : index
    %c0_70 = arith.constant 0 : index
    %62 = vector.load %arg3[%c0_66, %c0_67, %c2_68, %c2_69, %c0_70] : memref<1x1x10x18x4xbf16, #tpu.memory_space<vmem>>, vector<1x1x8x16x4xbf16>
    %63 = vector.shape_cast %62 : vector<1x1x8x16x4xbf16> to vector<8x16x4xbf16>
    %64 = vector.shape_cast %63 : vector<8x16x4xbf16> to vector<128x4xbf16>
    %c8 = arith.constant 8 : index
    %c0_71 = arith.constant 0 : index
    %c0_72 = arith.constant 0 : index
    %65 = vector.load %arg4[%c8, %c0_71, %c0_72] : memref<9x4x128xbf16, #tpu.memory_space<vmem>>, vector<1x4x128xbf16>
    %66 = vector.shape_cast %65 : vector<1x4x128xbf16> to vector<4x128xbf16>
    %cst_73 = arith.constant dense<0.000000e+00> : vector<128x128xf32>
    %67 = tpu.matmul %64, %66, %cst_73 {dimension_numbers = #tpu.dot_dimension_numbers<[1], [0], [0], [1], [0, 0, 1, 1], [], []>} : vector<128x4xbf16>, vector<4x128xbf16>, vector<128x128xf32> -> vector<128x128xf32>
    %68 = arith.addf %61, %67 : vector<128x128xf32>
    %c0_74 = arith.constant 0 : index
    %69 = memref.load %arg2[%c0_74] : memref<1xf32, #tpu.memory_space<smem>>
    %cst_75 = arith.constant 1.000000e-01 : f32
    %70 = arith.maximumf %69, %cst_75 : f32
    %cst_76 = arith.constant 9.99999997E-7 : f32
    %cst_77 = arith.constant 1.000000e+04 : f32
    %71 = vector.broadcast %cst_76 : f32 to vector<128x128xf32>
    %72 = arith.maximumf %71, %68 : vector<128x128xf32>
    %73 = vector.broadcast %cst_77 : f32 to vector<128x128xf32>
    %74 = arith.minimumf %73, %72 : vector<128x128xf32>
    %75 = math.log %74 : vector<128x128xf32>
    %76 = vector.broadcast %70 : f32 to vector<128x128xf32>
    %77 = arith.mulf %76, %75 : vector<128x128xf32>
    %78 = math.exp %77 : vector<128x128xf32>
    %c0_78 = arith.constant 0 : index
    %c0_79 = arith.constant 0 : index
    %79 = vector.load %arg7[%c0_78, %c0_79] : memref<1x128xf32, #tpu.memory_space<vmem>>, vector<1x128xf32>
    %cst_80 = arith.constant dense<0.000000e+00> : vector<128xf32>
    %80 = vector.multi_reduction <add>, %78, %cst_80 [0] : vector<128x128xf32> to vector<128xf32>
    %81 = vector.shape_cast %80 : vector<128xf32> to vector<1x128xf32>
    %82 = arith.addf %79, %81 : vector<1x128xf32>
    %c0_81 = arith.constant 0 : index
    %c0_82 = arith.constant 0 : index
    %83 = vector.load %arg7[%c0_81, %c0_82] : memref<1x128xf32, #tpu.memory_space<vmem>>, vector<1x128xf32>
    tpu.vector_store %arg7[%c0_81, %c0_82], %82 {strides = array<i32>} : memref<1x128xf32, #tpu.memory_space<vmem>>, vector<1x128xf32>,
    %c1_i32 = arith.constant 1 : i32
    %84 = arith.cmpi eq, %arg1, %c1_i32 : i32
    %85 = arith.extui %84 : i1 to i32
    %c0_i32_83 = arith.constant 0 : i32
    %86 = arith.cmpi ne, %85, %c0_i32_83 : i32
    scf.if %86 {
      %c0_84 = arith.constant 0 : index
      %c0_85 = arith.constant 0 : index
      %87 = vector.load %arg7[%c0_84, %c0_85] : memref<1x128xf32, #tpu.memory_space<vmem>>, vector<1x128xf32>
      %cst_86 = arith.constant 3.906250e-03 : f32
      %88 = vector.broadcast %cst_86 : f32 to vector<1x128xf32>
      %89 = arith.mulf %87, %88 : vector<1x128xf32>
      %cst_87 = arith.constant 1.000000e-35 : f32
      %90 = vector.broadcast %cst_87 : f32 to vector<1x128xf32>
      %91 = arith.maximumf %89, %90 : vector<1x128xf32>
      %92 = math.log %91 : vector<1x128xf32>
      %93 = vector.broadcast %70 : f32 to vector<1x128xf32>
      %94 = arith.divf %92, %93 : vector<1x128xf32>
      %95 = math.exp %94 : vector<1x128xf32>
      %96 = math.absf %95 : vector<1x128xf32>
      %97 = tpu.iota {dimensions = array<i32: 1>} : vector<1x128xi32>
      %c32_i32 = arith.constant 32 : i32
      %98 = vector.broadcast %c32_i32 : i32 to vector<1x128xi32>
      %99 = arith.cmpi slt, %97, %98 : vector<1x128xi32>
      %cst_88 = arith.constant 0.000000e+00 : f32
      %100 = vector.broadcast %cst_88 : f32 to vector<1x128xf32>
      %101 = arith.select %99, %96, %100 : vector<1x128xi1>, vector<1x128xf32>
      %102 = arith.mulf %101, %101 : vector<1x128xf32>
      %cst_89 = arith.constant dense<0.000000e+00> : vector<1xf32>
      %103 = vector.multi_reduction <add>, %102, %cst_89 [1] : vector<1x128xf32> to vector<1xf32>
      %104 = vector.shape_cast %103 : vector<1xf32> to vector<1x1xf32>
      %cst_90 = arith.constant 1.000000e-10 : f32
      %105 = vector.broadcast %cst_90 : f32 to vector<1x1xf32>
      %106 = arith.addf %104, %105 : vector<1x1xf32>
      %107 = math.sqrt %106 : vector<1x1xf32>
      %108 = vector.broadcast %107 : vector<1x1xf32> to vector<1x128xf32>
      %109 = arith.divf %101, %108 : vector<1x128xf32>
      %c0_91 = arith.constant 0 : index
      %c0_92 = arith.constant 0 : index
      %c0_93 = arith.constant 0 : index
      %110 = vector.load %arg6[%c0_91, %c0_92, %c0_93] : memref<1x1x128xf32, #tpu.memory_space<vmem>>, vector<1x1x128xf32>
      %111 = vector.shape_cast %110 : vector<1x1x128xf32> to vector<1x128xf32>
      %112 = vector.shape_cast %109 : vector<1x128xf32> to vector<1x1x128xf32>
      tpu.vector_store %arg6[%c0_91, %c0_92, %c0_93], %112 {strides = array<i32>} : memref<1x1x128xf32, #tpu.memory_space<vmem>>, vector<1x1x128xf32>,
    } else {
    }
    return
  }
  func.func @transform_0(%arg0: i32, %arg1: i32) -> i32 {
    %c0_i32 = arith.constant 0 : i32
    %c0_i32_0 = arith.constant 0 : i32
    return %c0_i32 : i32
  }
  func.func @transform_1(%arg0: i32, %arg1: i32) -> (i32, i32, i32, i32, i32) {
    %c0_i32 = arith.constant 0 : i32
    %c0_i32_0 = arith.constant 0 : i32
    %c0_i32_1 = arith.constant 0 : i32
    %c0_i32_2 = arith.constant 0 : i32
    return %arg0, %arg1, %c0_i32, %c0_i32_0, %c0_i32_1 : i32, i32, i32, i32, i32
  }
  func.func @transform_2(%arg0: i32, %arg1: i32) -> (i32, i32, i32) {
    %c0_i32 = arith.constant 0 : i32
    %c0_i32_0 = arith.constant 0 : i32
    %c0_i32_1 = arith.constant 0 : i32
    %c0_i32_2 = arith.constant 0 : i32
    return %c0_i32, %c0_i32_0, %c0_i32_1 : i32, i32, i32
  }
  func.func @transform_3(%arg0: i32, %arg1: i32) -> (i32, i32) {
    %c0_i32 = arith.constant 0 : i32
    %c0_i32_0 = arith.constant 0 : i32
    %c0_i32_1 = arith.constant 0 : i32
    return %c0_i32, %c0_i32_0 : i32, i32
  }
  func.func @transform_4(%arg0: i32, %arg1: i32) -> (i32, i32, i32) {
    %c0_i32 = arith.constant 0 : i32
    %c0_i32_0 = arith.constant 0 : i32
    %c0_i32_1 = arith.constant 0 : i32
    return %arg0, %c0_i32, %c0_i32_0 : i32, i32, i32
  }
}

</mosaic_0001>

<bundles_post_ra>
// kernel: gemnet_forward.1
= control target key start
LH: loop header
LB: loop body
LE: loop exit
PB: predicated region body
PF: predicated region fallthrough
CT: control target
= control target key end

     0   :  { %s4939_s0 = inlined_call_operand.<no memory space> [shape: f32[1], index: 0, kind: input, shape index: {}]   ;;  %s4940_s1 = inlined_call_operand.vmem [shape: bf16[2,2,10,18,4], index: 1, kind: input, shape index: {}]   ;;  %s4941_s2 = inlined_call_operand.vmem [shape: bf16[9,4,128], index: 2, kind: input, shape index: {}]   ;;  %s4942_s3 = inlined_call_operand.vmem [shape: f32[1,128], index: 3, kind: input, shape index: {}]   ;;  %s4943_s4 = inlined_call_operand.hbm [shape: f32[2,1,128], index: 4, kind: output, shape index: {}]  }
   0x1   :  { %9 = sst [smem:[#allocation3]] %s4939_s0 }
   0x2   :  { %10 = vsyncpa [#allocation5], 0 }
   0x3   :  { %12 = vsyncpa [#allocation5 + $0x1], 0  ;;  %s3992_s17 = smov 0   ;;  %s3994_s18 = smov 0  }
   0x4   :  { %s3996_s19 = smov 0   ;;  %s3998_s20 = smov 0  }
   0x5   :  { %s4000_s21 = smov 0   ;;  %s4002_s22 = smov 0  }
   0x6   :  { %s4004_s23 = smov 0   ;;  %s4006_s24 = smov 0  }
   0x7 LB: > { %s3007_s0 = sadd.s32 4294967295, %s3959_s24   ;;  %s3008_s25 = sadd.s32 4294967294, %s3959_s24   ;;  %s3959_s24 = sphi %s4006_s24, %s18_s24   ;;  %s3955_s23 = sphi %s4004_s23, %s4956_s23   ;;  %s3951_s22 = sphi %s4002_s22, %s4955_s22   ;;  %s3947_s21 = sphi %s4000_s21, %s4954_s21   ;;  %s3943_s20 = sphi %s3998_s20, %s4953_s20   ;;  %s3939_s19 = sphi %s3996_s19, %s4952_s19   ;;  %s3935_s18 = sphi %s3994_s18, %s4951_s18   ;;  %s3931_s17 = sphi %s3992_s17, %s4950_s17  }
   0x8   : > { %s27_s26 = sadd.s32 1, %s3951_s22  ;;  %s30_s27 = sadd.s32 1, %s3955_s23 }
   0x9   : > { %p28_p0 = scmp.ge.s32.totalorder %s27_s26, 2  ;;  %p138_p1 = scmp.ne.s32.totalorder %s3939_s19, %s3935_s18 }
   0xa   : > { %p139_p2 = scmp.eq.s32.totalorder %s3007_s0, 3  ;;  %p144_p4 = scmp.ne.s32.totalorder %s3935_s18, %s3931_s17 }
   0xb   : > { %s4958_s26 = smov (%p28_p0, %s27_s26), 0  ;;  %s4960_s27 = smov (!%p28_p0, %s30_s27), %s3955_s23 }
   0xc   : > { %p4041_p3 = por %p139_p2, %p138_p1  ;;  %p32_p5 = scmp.ge.s32.totalorder %s4960_s27, 2 }
   0xd   : > { %p145_p6 = scmp.eq.s32.totalorder %s3008_s25, 3  ;;  %p3011_p7 = scmp.ge.s32.totalorder %s3959_s24, 1 }
   0xe   : > { %p184_p8 = scmp.lt.s32.totalorder %s3959_s24, 5  ;;  %s4962_s27 = smov (%p32_p5, %s4960_s27), 0 }
   0xf   : > { %p4051_p9 = por %p145_p6, %p144_p4  ;;  %s125_s30 = ssub.s32 %s3955_s23, %s4962_s27 }
  0x10   : > { %p185_p10 = pnand %p3011_p7, %p184_p8  ;;  %s128_s5 = sadd.s32 1, %s3939_s19 }
  0x11   : > { %p126_p11 = scmp.eq.s32.totalorder %s125_s30, 0  ;;  %s211_s7 = sand.u32 (!%p185_p10), 1, %s3935_s18  }
  0x12   : > { %188 = sbr.rel (%p185_p10) target bundleno = 715 (0x2cb), region = 36  ;;  %p213_p12 = scmp.lt.s32.totalorder (!%p185_p10), %s3947_s21, 1 }
  0x13   : > { %s4059_s6 = scalar_select %p126_p11, %s3939_s19, %s128_s5  }
  0x14   : > { %p215_p13 = scmp.lt.s32.totalorder (!%p185_p10), %s3943_s20, 1  ;;  %s4073_s0 = scalar_lea.vmem (!%p185_p10), [#allocation4], %s211_s7 }
  0x15   : > { %p3013_p0 = scmp.ne.s32.totalorder (!%p185_p10), %s3943_s20, 0 }
  0x19   : > { %s214_s8 = scalar_select %p213_p12, %s3947_s21, 1 }
  0x1a   : > { %s216_s9 = scalar_select %p215_p13, %s3943_s20, 1 }
  0x1b   : > { %s3691_s10 = smul.u32 60, %s214_s8  ;;  %v3961_v0 = vmov (!%p3013_p0), 0.0  }
  0x1c   : > { %s3690_s11 = smul.u32 30, %s216_s9  ;;  %227 = vst [vmem:[#allocation2] sm:$0x1] (!%p3013_p0), %v3961_v0 }
  0x1d   : > { %226 = sbr.rel (%p3013_p0) target bundleno = 36 (0x24), region = 40 }
  0x1e   : > { %s219_s12 = sadd.s32 %s3691_s10, %s3690_s11 }
  0x1f   : > { %s3012_s13 = sshll.u32 %s219_s12, 2 }
  0x20   : > { %s4069_s16 = scalar_lea.vmem %s4940_s1, %s3012_s13 }
  0x24 PF: > { %v251_v1 = vld [vmem:[%s4941_s2] sm:$0x3]  ;;  %vm317_vm0 = vcmask 1041408   ;;  %vm292_vm1 = vcmask 31744   ;;  %v3766_v4 = vld [vmem:[%s4069_s16 + $0xc] sm:$0xff]   ;;  %v3767_v8 = vld [vmem:[%s4069_s16 + $0x18] sm:$0xff]  }
  0x25   : > { %v3765_v2 = vld [vmem:[%s4069_s16] sm:$0xff]   ;;  %3680 = vmatprep.subr.msk.bf16.mxu1 %vm317_vm0, %v251_v1  ;;  %v319_v3 = vsel %vm317_vm0, %v251_v1, 0  ;;  %v3130_v5 = vld [vmem:[%s4941_s2 + $0x8] sm:$0x3]  ;;  %vm458_vm2 = vsmask.f32 3328 }
  0x26   : > { %3373 = vmatpush3.bf16.msra.mxu1 %v319_v3  ;;  %3374 = vmatprep.mubr.msk.bf16.mxu1 %vm292_vm1, %v3765_v2  ;;  %v4089_v6 = vsel %vm317_vm0, %v3130_v5, 0  ;;  %v3031_v7 = vld [vmem:[%s4941_s2 + $0x2] sm:$0x3]  ;;  %vm459_vm3 = vsmask.f32 7440  ;;  %v3768_v21 = vld [vmem:[%s4069_s16 + $0x24] sm:$0xff]  }
  0x27   : > { %3684 = vmatprep.subr.msk.bf16.mxu0 %vm317_vm0, %v3130_v5  ;;  %3681 = vmatprep.subr.msk.bf16.mxu1 %vm317_vm0, %v3031_v7  ;;  %v704_v9 = vsel %vm317_vm0, %v3031_v7, 0  ;;  %v3106_v10 = vld [vmem:[%s4069_s16 + $0xc] sm:$0xf]  ;;  %v4101_v11 = vld [vmem:[%s4069_s16 + $0x10] sm:$0xf]  ;;  %vm4130_vm4 = vmor %vm458_vm2, %vm459_vm3  ;;  %vm851_vm5 = vcmask 1042432  }
  0x28   : > { %3445 = vmatpush3.bf16.msra.mxu0 %v4089_v6  ;;  %v4105_v12 = vld [vmem:[%s4069_s16 + $0x14] sm:$0x1]  ;;  %v1300_v13 = vshrl.u32 %v3106_v10, 16  ;;  %v1303_v14 = vshll.u32 %v3106_v10, 16  ;;  %v1309_v15 = vshll.u32 %v4101_v11, 16  ;;  %v1313_v16 = vshrl.u32 %v4101_v11, 16 }
  0x29   : > { %3375 = vmatmul.mubr.msk.bf16.vlgmr.msra.gmra.mrb[0].mxu1 %vm292_vm1, %v3766_v4  ;;  %v1319_v17 = vshll.u32 %v4105_v12, 16  ;;  %v1691_v18 = vrot.slane %v4101_v11, 5  ;;  %v1694_v19 = vrot.slane %v4105_v12, 5  ;;  %v3163_v20 = vld [vmem:[%s4941_s2 + $0xa] sm:$0x3]  ;;  %v3769_v26 = vld [vmem:[%s4069_s16 + $0x30] sm:$0xff]  }
  0x2a   : > { %3391 = vmatpush3.bf16.msra.mxu1 %v704_v9  ;;  %3378 = vmatprep.mubr.msk.bf16.mxu1 %vm292_vm1, %v3767_v8  ;;  %v1302_v22 = vrot.slane %v1300_v13, 4  ;;  %v1305_v23 = vrot.slane %v1303_v14, 5  ;;  %v1311_v24 = vrot.slane %v1309_v15, 5  ;;  %v1315_v25 = vrot.slane %v1313_v16, 4  ;;  %v3109_v28 = vld [vmem:[%s4069_s16 + $0x18] sm:$0xf] }
  0x2b   : > { %3686 = vmatprep.subr.msk.bf16.mxu0 %vm317_vm0, %v3163_v20  ;;  %v1321_v27 = vrot.slane %v1319_v17, 5  ;;  %v4120_v29 = vsel %vm317_vm0, %v3163_v20, 0  ;;  %v4123_v32 = vld [vmem:[%s4069_s16 + $0x1c] sm:$0xf]  ;;  %v4126_v33 = vld [vmem:[%s4069_s16 + $0x20] sm:$0x1] }
  0x2c   : > { %v1306_v30 = vor.u32 %v1305_v23, %v1302_v22  ;;  %v1316_v31 = vor.u32 %v1315_v25, %v1311_v24  ;;  %v1324_v34 = vshrl.u32 %v3109_v28, 16  ;;  %v1327_v35 = vshll.u32 %v3109_v28, 16  ;;  %v3112_v49 = vld [vmem:[%s4069_s16 + $0x24] sm:$0xf]  ;;  %v4151_v54 = vld [vmem:[%s4069_s16 + $0x28] sm:$0xf] }
  0x2d   : > { %v1333_v37 = vshll.u32 %v4123_v32, 16  ;;  %v1337_v38 = vshrl.u32 %v4123_v32, 16  ;;  %v1343_v39 = vshll.u32 %v4126_v33, 16  ;;  %v1698_v40 = vrot.slane %v4123_v32, 5  ;;  %v4154_v55 = vld [vmem:[%s4069_s16 + $0x2c] sm:$0x1] }
  0x2e   : > { %v1307_v41 = vrot.slane %v1306_v30, 4  ;;  %v1317_v42 = vrot.slane %v1316_v31, 4  ;;  %v1326_v43 = vrot.slane %v1324_v34, 4  ;;  %v1329_v44 = vrot.slane %v1327_v35, 5  ;;  %v3770_v60 = vld [vmem:[%s4069_s16 + $0x3c] sm:$0xff]   ;;  %v3771_v15 = vld [vmem:[%s4069_s16 + $0x48] sm:$0xff]  }
  0x2f   : > { %v1335_v45 = vrot.slane %v1333_v37, 5  ;;  %v1339_v46 = vrot.slane %v1337_v38, 4  ;;  %v1345_v47 = vrot.slane %v1343_v39, 5  ;;  %v4141_v48 = vrot.slane %v1698_v40, 4  ;;  %v3115_v1 = vld [vmem:[%s4069_s16 + $0x30] sm:$0xf] }
  0x30   : > { %v1312_v50 = vsel %vm4130_vm4, %v1307_v41, %v1311_v24  ;;  %v1322_v51 = vsel %vm4130_vm4, %v1317_v42, %v1321_v27  ;;  %v1330_v52 = vor.u32 %v1329_v44, %v1326_v43  ;;  %v1701_v53 = vrot.slane %v4126_v33, 5  ;;  %v4163_v5 = vld [vmem:[%s4069_s16 + $0x34] sm:$0xf]  ;;  %v4168_v14 = vld [vmem:[%s4069_s16 + $0x38] sm:$0x1]  ;;  %s4849_s15 = sld [smem:[#allocation3]] }
  0x31   : > { %3379 = vmatmul.mubr.msk.bf16.gmra.mrb[4].mxu1 %vm292_vm1, %v3768_v21  ;;  %v3131_v56 = vcombine.low %v1312_v50, %v1322_v51  ;;  %v1340_v57 = vor.u32 %v1339_v46, %v1335_v45  ;;  %v1348_v58 = vshrl.u32 %v3112_v49, 16  ;;  %v1351_v59 = vshll.u32 %v3112_v49, 16  ;;  %v3196_v27 = vld [vmem:[%s4941_s2 + $0xc] sm:$0x3]  ;;  %v434_v50 = vld [vmem:[%s4069_s16] sm:$0xf] }
  0x32   : > { %3382 = vmatprep.mubr.msk.bf16.mxu1 %vm292_vm1, %v3769_v26  ;;  %v1331_v61 = vrot.slane %v1330_v52, 4  ;;  %v1357_v62 = vshll.u32 %v4151_v54, 16  ;;  %v1361_v63 = vshrl.u32 %v4151_v54, 16  ;;  %v1367_v0 = vshll.u32 %v4154_v55, 16  ;;  %v3147_v26 = vld [vmem:[%s4069_s16 + $0xc] sm:$0xe] }
  0x33   : > { %3446 = vmatprep.mubr.msk.bf16.mxu0 %vm292_vm1, %v3131_v56  ;;  %v1341_v2 = vrot.slane %v1340_v57, 4  ;;  %v1350_v3 = vrot.slane %v1348_v58, 4  ;;  %v1353_v4 = vrot.slane %v1351_v59, 5  ;;  %v1372_v7 = vshrl.u32 %v3115_v1, 16  ;;  %v3772_v57 = vld [vmem:[%s4069_s16 + $0x54] sm:$0xff]   ;;  %p3287_p1 = scmp.ne.s32.totalorder %s3943_s20, 1 }
  0x34   : > { %v1336_v8 = vsel %vm4130_vm4, %v1331_v61, %v1335_v45  ;;  %v1359_v9 = vrot.slane %v1357_v62, 5  ;;  %v1363_v10 = vrot.slane %v1361_v63, 4  ;;  %v1369_v13 = vrot.slane %v1367_v0, 5  ;;  %v3148_v45 = vld [vmem:[%s4069_s16 + $0x18] sm:$0xe] }
  0x35   : > { %v1346_v16 = vsel %vm4130_vm4, %v1341_v2, %v1345_v47  ;;  %v1354_v17 = vor.u32 %v1353_v4, %v1350_v3  ;;  %v1374_v20 = vrot.slane %v1372_v7, 4  ;;  %v1375_v21 = vshll.u32 %v3115_v1, 16  ;;  %v4218_v58 = vld [vmem:[%s4069_s16 + $0x8] sm:$0x1]  ;;  %v3149_v33 = vld [vmem:[%s4069_s16 + $0x24] sm:$0xe] }
  0x36   : > { %v3132_v22 = vcombine.low %v1336_v8, %v1346_v16  ;;  %v1364_v23 = vor.u32 %v1363_v10, %v1359_v9  ;;  %v1381_v24 = vshll.u32 %v4163_v5, 16  ;;  %v1385_v25 = vshrl.u32 %v4163_v5, 16  ;;  %v437_v32 = vld [vmem:[%s4069_s16 + $0xc] sm:$0xf]  ;;  %v3056_v2 = vld [vmem:[%s4941_s2 + $0x4] sm:$0x3] }
  0x37   : > { %v1355_v28 = vrot.slane %v1354_v17, 4  ;;  %v1377_v30 = vrot.slane %v1375_v21, 5  ;;  %v1391_v31 = vshll.u32 %v4168_v14, 16  ;;  %vm852_vm6 = vcmask 1046532   ;;  %3682 = vmatprep.subr.msk.bf16.mxu1 %vm317_vm0, %v3056_v2  ;;  %v4253_v21 = vld [vmem:[%s4069_s16 + $0x14] sm:$0x1] }
  0x38   : > { %3447 = vmatmul.mubr.msk.bf16.vlgmr.msra.gmra.mrb[0].mxu0 %vm292_vm1, %v3132_v22  ;;  %v1365_v34 = vrot.slane %v1364_v23, 4  ;;  %v1383_v35 = vrot.slane %v1381_v24, 5  ;;  %v1387_v37 = vrot.slane %v1385_v25, 4  ;;  %vm4184_vm7 = vmor %vm851_vm5, %vm852_vm6  ;;  %v3155_v39 = vrot.slane %v3147_v26, 9  ;;  %s3962_s25 = smov 0.1  }
  0x39   : > { %3383 = vmatmul.mubr.msk.bf16.gmra.mrb[8].mxu1 %vm292_vm1, %v3770_v60  ;;  %3463 = vmatpush3.bf16.msra.mxu0 %v4120_v29  ;;  %v1360_v41 = vsel %vm4130_vm4, %v1355_v28, %v1359_v9  ;;  %v1378_v42 = vor.u32 %v1377_v30, %v1374_v20  ;;  %v1393_v43 = vrot.slane %v1391_v31, 5  ;;  %v1693_v44 = vrot.slane %v1691_v18, 4  ;;  %v4246_v9 = vld [vmem:[%s4069_s16 + $0x10] sm:$0xf]  ;;  %s2747_s30 = smax.f32 %s3962_s25, %s4849_s15 }
  0x3a   : > { %3386 = vmatprep.mubr.msk.bf16.mxu1 %vm292_vm1, %v3771_v15  ;;  %v1370_v46 = vsel %vm4130_vm4, %v1365_v34, %v1369_v13  ;;  %v1388_v47 = vor.u32 %v1387_v37, %v1383_v35  ;;  %v1692_v29 = vsel %vm4184_vm7, %v3155_v39, %v1691_v18  ;;  %3687 = vmatprep.subr.msk.bf16.mxu0 %vm317_vm0, %v3196_v27  ;;  %v3156_v49 = vrot.slane %v3148_v45, 9  ;;  %v4215_v18 = vld [vmem:[%s4069_s16 + $0x4] sm:$0xf]  ;;  %v3150_v31 = vld [vmem:[%s4069_s16 + $0x30] sm:$0xe] }
  0x3b   : > { %v3133_v51 = vcombine.low %v1360_v41, %v1370_v46  ;;  %v1379_v52 = vrot.slane %v1378_v42, 4  ;;  %v1695_v56 = vsel %vm4184_vm7, %v1693_v44, %v1694_v19  ;;  %v4212_v11 = vsel %vm4184_vm7, %v4141_v48, %v1701_v53  ;;  %v440_v45 = vld [vmem:[%s4069_s16 + $0x18] sm:$0xf] }
  0x3c   : > { %v1389_v59 = vrot.slane %v1388_v47, 4  ;;  %v3164_v60 = vcombine.low %v1692_v29, %v1695_v56  ;;  %v4224_v12 = vsel %vm4184_vm7, %v3156_v49, %v1698_v40  ;;  %v4227_v19 = vsel %vm317_vm0, %v3196_v27, 0 }
  0x3d   : > { %3450 = vmatprep.mubr.msk.bf16.mxu0 %vm292_vm1, %v3133_v51  ;;  %v1384_v48 = vsel %vm4130_vm4, %v1379_v52, %v1383_v35  ;;  %v3165_v53 = vcombine.low %v4224_v12, %v4212_v11  ;;  %v462_v61 = vshrl.u32 %v434_v50, 16  ;;  %v465_v62 = vshll.u32 %v434_v50, 16  ;;  %v4271_v50 = vld [vmem:[%s4069_s16 + $0x1c] sm:$0xf]  ;;  %v4275_v11 = vld [vmem:[%s4069_s16 + $0x20] sm:$0x1] }
  0x3e   : > { %v1394_v40 = vsel %vm4130_vm4, %v1389_v59, %v1393_v43  ;;  %v471_v63 = vshll.u32 %v4215_v18, 16  ;;  %v475_v0 = vshrl.u32 %v4215_v18, 16  ;;  %v481_v1 = vshll.u32 %v4218_v58, 16 }
  0x3f   : > { %v3134_v3 = vcombine.low %v1384_v48, %v1394_v40  ;;  %v464_v4 = vrot.slane %v462_v61, 4  ;;  %v467_v7 = vrot.slane %v465_v62, 5  ;;  %v3157_v8 = vrot.slane %v3149_v33, 9  ;;  %v4281_v48 = vld [vmem:[%s4069_s16 + $0x40] sm:$0xf] }
  0x40   : > { %v473_v10 = vrot.slane %v471_v63, 5  ;;  %v477_v13 = vrot.slane %v475_v0, 4  ;;  %v483_v15 = vrot.slane %v481_v1, 5  ;;  %v1705_v16 = vrot.slane %v4151_v54, 5  ;;  %v3151_v40 = vld [vmem:[%s4069_s16 + $0x3c] sm:$0xe] }
  0x41   : > { %3387 = vmatmul.mubr.msk.bf16.gmra.mrb[12].mxu1 %vm292_vm1, %v3772_v57  ;;  %3451 = vmatmul.mubr.msk.bf16.gmra.mrb[4].mxu0 %vm292_vm1, %v3134_v3  ;;  %v468_v17 = vor.u32 %v467_v7, %v464_v4  ;;  %v1708_v20 = vrot.slane %v4154_v55, 5  ;;  %v486_v22 = vshrl.u32 %v437_v32, 16  ;;  %v489_v23 = vshll.u32 %v437_v32, 16 }
  0x42   : > { %3464 = vmatprep.mubr.msk.bf16.mxu0 %vm292_vm1, %v3164_v60  ;;  %v478_v24 = vor.u32 %v477_v13, %v473_v10  ;;  %v1706_v25 = vsel %vm4184_vm7, %v3157_v8, %v1705_v16  ;;  %v1707_v26 = vrot.slane %v1705_v16, 4  ;;  %v495_v54 = vshll.u32 %v4246_v9, 16 }
  0x43   : > { %v469_v27 = vrot.slane %v468_v17, 4  ;;  %v488_v28 = vrot.slane %v486_v22, 4  ;;  %v491_v30 = vrot.slane %v489_v23, 5  ;;  %v499_v55 = vshrl.u32 %v4246_v9, 16 }
  0x44   : > { %v479_v34 = vrot.slane %v478_v24, 4  ;;  %v1709_v35 = vsel %vm4184_vm7, %v1707_v26, %v1708_v20  ;;  %v497_v37 = vrot.slane %v495_v54, 5  ;;  %v505_v39 = vshll.u32 %v4253_v21, 16 }
  0x45   : > { %v474_v41 = vsel %vm4130_vm4, %v469_v27, %v473_v10  ;;  %v3166_v42 = vcombine.low %v1706_v25, %v1709_v35  ;;  %v492_v43 = vor.u32 %v491_v30, %v488_v28  ;;  %v501_v44 = vrot.slane %v499_v55, 4  ;;  %v4300_v10 = vld [vmem:[%s4069_s16 + $0x28] sm:$0xf]  ;;  %v4305_v25 = vld [vmem:[%s4069_s16 + $0x2c] sm:$0x1] }
  0x46   : > { %v484_v46 = vsel %vm4130_vm4, %v479_v34, %v483_v15  ;;  %v507_v47 = vrot.slane %v505_v39, 5  ;;  %v3158_v29 = vrot.slane %v3150_v31, 9  ;;  %v1712_v49 = vrot.slane %v4163_v5, 5  ;;  %v3120_v5 = vld [vmem:[%s4069_s16 + $0x44] sm:$0x1] }
  0x47   : > { %v3032_v51 = vcombine.low %v474_v41, %v484_v46  ;;  %v493_v52 = vrot.slane %v492_v43, 4  ;;  %v502_v56 = vor.u32 %v501_v44, %v497_v37  ;;  %v1715_v57 = vrot.slane %v4168_v14, 5  ;;  %v3122_v41 = vld [vmem:[%s4069_s16 + $0x4c] sm:$0xf]  ;;  %v3152_v46 = vld [vmem:[%s4069_s16 + $0x48] sm:$0xe] }
  0x48   : > { %v1713_v59 = vsel %vm4184_vm7, %v3158_v29, %v1712_v49  ;;  %v1714_v60 = vrot.slane %v1712_v49, 4  ;;  %v961_v12 = vsel %vm317_vm0, %v3056_v2, 0  ;;  %v510_v33 = vshrl.u32 %v440_v45, 16  ;;  %v443_v2 = vld [vmem:[%s4069_s16 + $0x24] sm:$0xf] }
  0x49   : > { %3465 = vmatmul.mubr.msk.bf16.vlgmr.msra.gmra.mrb[0].mxu0 %vm292_vm1, %v3165_v53  ;;  %3392 = vmatprep.mubr.msk.bf16.mxu1 %vm292_vm1, %v3032_v51  ;;  %v498_v14 = vsel %vm4130_vm4, %v493_v52, %v497_v37  ;;  %v503_v61 = vrot.slane %v502_v56, 4  ;;  %v513_v62 = vshll.u32 %v440_v45, 16  ;;  %v519_v32 = vshll.u32 %v4271_v50, 16  ;;  %v3123_v52 = vld [vmem:[%s4069_s16 + $0x50] sm:$0x1] }
  0x4a   : > { %3481 = vmatpush3.bf16.msra.mxu0 %v4227_v19  ;;  %3468 = vmatprep.mubr.msk.bf16.mxu0 %vm292_vm1, %v3166_v42  ;;  %v1716_v63 = vsel %vm4184_vm7, %v1714_v60, %v1715_v57  ;;  %v512_v0 = vrot.slane %v510_v33, 4  ;;  %v523_v53 = vshrl.u32 %v4271_v50, 16  ;;  %v529_v1 = vshll.u32 %v4275_v11, 16  ;;  %v446_v56 = vld [vmem:[%s4069_s16 + $0x30] sm:$0xf] }
  0x4b   : > { %v508_v3 = vsel %vm4130_vm4, %v503_v61, %v507_v47  ;;  %v3167_v4 = vcombine.low %v1713_v59, %v1716_v63  ;;  %v515_v7 = vrot.slane %v513_v62, 5  ;;  %v521_v8 = vrot.slane %v519_v32, 5  ;;  %v4326_v33 = vld [vmem:[%s4069_s16 + $0x34] sm:$0xf]  ;;  %v4330_v32 = vld [vmem:[%s4069_s16 + $0x38] sm:$0x1] }
  0x4c   : > { %v3033_v19 = vcombine.low %v498_v14, %v508_v3  ;;  %v525_v13 = vrot.slane %v523_v53, 4  ;;  %v531_v15 = vrot.slane %v529_v1, 5  ;;  %v3159_v16 = vrot.slane %v3151_v40, 9  ;;  %v4338_v1 = vld [vmem:[%s4941_s2 + $0xe] sm:$0x3] }
  0x4d   : > { %v516_v17 = vor.u32 %v515_v7, %v512_v0  ;;  %v1719_v20 = vrot.slane %v4281_v48, 5  ;;  %v1722_v22 = vrot.slane %v3120_v5, 5  ;;  %v534_v23 = vshrl.u32 %v443_v2, 16  ;;  %v4345_v7 = vld [vmem:[%s4069_s16 + $0x58] sm:$0xf]  ;;  %3688 = vmatprep.subr.msk.bf16.mxu0 %vm317_vm0, %v4338_v1 }
  0x4e   : > { %3393 = vmatmul.mubr.msk.bf16.vlgmr.msra.gmra.mrb[0].mxu1 %vm292_vm1, %v3033_v19  ;;  %v526_v24 = vor.u32 %v525_v13, %v521_v8  ;;  %v537_v26 = vshll.u32 %v443_v2, 16  ;;  %v543_v54 = vshll.u32 %v4300_v10, 16  ;;  %v547_v27 = vshrl.u32 %v4300_v10, 16  ;;  %v3153_v19 = vld [vmem:[%s4069_s16 + $0x54] sm:$0xe] }
  0x4f   : > { %3409 = vmatpush3.bf16.msra.mxu1 %v961_v12  ;;  %v517_v28 = vrot.slane %v516_v17, 4  ;;  %v1720_v30 = vsel %vm4184_vm7, %v3159_v16, %v1719_v20  ;;  %v1721_v55 = vrot.slane %v1719_v20, 4  ;;  %v536_v31 = vrot.slane %v534_v23, 4  ;;  %v449_v20 = vld [vmem:[%s4069_s16 + $0x3c] sm:$0xf] }
  0x50   : > { %v527_v34 = vrot.slane %v526_v24, 4  ;;  %v539_v35 = vrot.slane %v537_v26, 5  ;;  %v545_v37 = vrot.slane %v543_v54, 5  ;;  %v549_v39 = vrot.slane %v547_v27, 4 }
  0x51   : > { %3469 = vmatmul.mubr.msk.bf16.gmra.mrb[4].mxu0 %vm292_vm1, %v3167_v4  ;;  %v522_v42 = vsel %vm4130_vm4, %v517_v28, %v521_v8  ;;  %v1723_v43 = vsel %vm4184_vm7, %v1721_v55, %v1722_v22  ;;  %v553_v44 = vshll.u32 %v4305_v25, 16  ;;  %v1429_v45 = vshll.u32 %v3122_v41, 16  ;;  %v4348_v8 = vld [vmem:[%s4069_s16 + $0x5c] sm:$0x1]  ;;  %v4367_v55 = vld [vmem:[%s4069_s16 + $0x40] sm:$0xf] }
  0x52   : > { %v532_v47 = vsel %vm4130_vm4, %v527_v34, %v531_v15  ;;  %v3168_v29 = vcombine.low %v1720_v30, %v1723_v43  ;;  %v540_v49 = vor.u32 %v539_v35, %v536_v31  ;;  %v550_v51 = vor.u32 %v549_v39, %v545_v37  ;;  %v4370_v39 = vld [vmem:[%s4069_s16 + $0x44] sm:$0x1] }
  0x53   : > { %v3034_v57 = vcombine.low %v522_v42, %v532_v47  ;;  %v555_v59 = vrot.slane %v553_v44, 5  ;;  %v4323_v60 = vrot.slane %v1429_v45, 5  ;;  %v1433_v12 = vshrl.u32 %v3122_v41, 16  ;;  %v4375_v45 = vld [vmem:[%s4069_s16 + $0x64] sm:$0xf] }
  0x54   : > { %3472 = vmatprep.mubr.msk.bf16.mxu0 %vm292_vm1, %v3168_v29  ;;  %v541_v5 = vrot.slane %v540_v49, 4  ;;  %v551_v14 = vrot.slane %v550_v51, 4  ;;  %v1439_v61 = vshll.u32 %v3123_v52, 16  ;;  %v3160_v62 = vrot.slane %v3152_v46, 9  ;;  %v3154_v46 = vld [vmem:[%s4069_s16 + $0x60] sm:$0xe] }
  0x55   : > { %3396 = vmatprep.mubr.msk.bf16.mxu1 %vm292_vm1, %v3034_v57  ;;  %v4333_v40 = vrot.slane %v1433_v12, 4  ;;  %v1726_v63 = vrot.slane %v3122_v41, 5  ;;  %v1729_v0 = vrot.slane %v3123_v52, 5  ;;  %v558_v53 = vshrl.u32 %v446_v56, 16  ;;  %v4381_v52 = vld [vmem:[%s4069_s16 + $0x68] sm:$0x1] }
  0x56   : > { %v546_v2 = vsel %vm4130_vm4, %v541_v5, %v545_v37  ;;  %v556_v3 = vsel %vm4130_vm4, %v551_v14, %v555_v59  ;;  %v561_v4 = vshll.u32 %v446_v56, 16  ;;  %v4353_v15 = vrot.slane %v1439_v61, 5  ;;  %v452_v5 = vld [vmem:[%s4069_s16 + $0x48] sm:$0xf] }
  0x57   : > { %v3035_v13 = vcombine.low %v546_v2, %v556_v3  ;;  %v1727_v16 = vsel %vm4184_vm7, %v3160_v62, %v1726_v63  ;;  %v1728_v17 = vrot.slane %v1726_v63, 4  ;;  %v560_v22 = vrot.slane %v558_v53, 4  ;;  %v4395_v53 = vld [vmem:[%s4941_s2 + $0x6] sm:$0x3] }
  0x58   : > { %v563_v23 = vrot.slane %v561_v4, 5  ;;  %v567_v24 = vshll.u32 %v4326_v33, 16  ;;  %v571_v26 = vshrl.u32 %v4326_v33, 16  ;;  %v1436_v54 = vor.u32 %v4333_v40, %v4323_v60  ;;  %3683 = vmatprep.subr.msk.bf16.mxu1 %vm317_vm0, %v4395_v53 }
  0x59   : > { %3397 = vmatmul.mubr.msk.bf16.gmra.mrb[4].mxu1 %vm292_vm1, %v3035_v13  ;;  %v1730_v27 = vsel %vm4184_vm7, %v1728_v17, %v1729_v0  ;;  %v577_v28 = vshll.u32 %v4330_v32, 16  ;;  %v3161_v30 = vrot.slane %v3153_v19, 9  ;;  %v1733_v42 = vrot.slane %v4345_v7, 5  ;;  %v4390_v0 = vld [vmem:[%s4069_s16 + $0x4c] sm:$0xf] }
  0x5a   : > { %v3169_v31 = vcombine.low %v1727_v16, %v1730_v27  ;;  %v564_v34 = vor.u32 %v563_v23, %v560_v22  ;;  %v569_v35 = vrot.slane %v567_v24, 5  ;;  %v573_v37 = vrot.slane %v571_v26, 4  ;;  %v4401_v13 = vld [vmem:[%s4069_s16 + $0x50] sm:$0x1] }
  0x5b   : > { %v579_v41 = vrot.slane %v577_v28, 5  ;;  %v1736_v43 = vrot.slane %v4348_v8, 5  ;;  %v582_v44 = vshrl.u32 %v449_v20, 16  ;;  %v585_v49 = vshll.u32 %v449_v20, 16  ;;  %v455_v28 = vld [vmem:[%s4069_s16 + $0x54] sm:$0xf] }
  0x5c   : > { %3473 = vmatmul.mubr.msk.bf16.gmra.mrb[8].mxu0 %vm292_vm1, %v3169_v31  ;;  %v565_v47 = vrot.slane %v564_v34, 4  ;;  %v574_v29 = vor.u32 %v573_v37, %v569_v35  ;;  %v591_v51 = vshll.u32 %v4367_v55, 16  ;;  %v1734_v56 = vsel %vm4184_vm7, %v3161_v30, %v1733_v42  ;;  %v3773_v37 = vld [vmem:[%s4069_s16 + $0x18] sm:$0xff]  }
  0x5d   : > { %v1735_v57 = vrot.slane %v1733_v42, 4  ;;  %v584_v59 = vrot.slane %v582_v44, 4  ;;  %v595_v12 = vshrl.u32 %v4367_v55, 16  ;;  %v587_v62 = vrot.slane %v585_v49, 5 }
  0x5e   : > { %v570_v14 = vsel %vm4130_vm4, %v565_v47, %v569_v35  ;;  %v575_v61 = vrot.slane %v574_v29, 4  ;;  %v593_v63 = vrot.slane %v591_v51, 5  ;;  %v601_v4 = vshll.u32 %v4370_v39, 16 }
  0x5f   : > { %v1737_v2 = vsel %vm4184_vm7, %v1735_v57, %v1736_v43  ;;  %v597_v3 = vrot.slane %v595_v12, 4  ;;  %v3162_v19 = vrot.slane %v3154_v46, 9  ;;  %v588_v20 = vor.u32 %v587_v62, %v584_v59  ;;  %v4418_v46 = vld [vmem:[%s4069_s16 + $0x58] sm:$0xf] }
  0x60   : > { %v580_v16 = vsel %vm4130_vm4, %v575_v61, %v579_v41  ;;  %v3170_v17 = vcombine.low %v1734_v56, %v1737_v2  ;;  %v1740_v22 = vrot.slane %v4375_v45, 5  ;;  %v603_v26 = vrot.slane %v601_v4, 5 }
  0x61   : > { %v3036_v23 = vcombine.low %v570_v14, %v580_v16  ;;  %v598_v24 = vor.u32 %v597_v3, %v593_v63  ;;  %v1743_v27 = vrot.slane %v4381_v52, 5  ;;  %v589_v30 = vrot.slane %v588_v20, 4  ;;  %v819_v16 = vld [vmem:[%s4069_s16] sm:$0xe] }
  0x62   : > { %3476 = vmatprep.mubr.msk.bf16.mxu0 %vm292_vm1, %v3170_v17  ;;  %v1741_v31 = vsel %vm4184_vm7, %v3162_v19, %v1740_v22  ;;  %v1742_v34 = vrot.slane %v1740_v22, 4  ;;  %v606_v35 = vshrl.u32 %v452_v5, 16  ;;  %v609_v42 = vshll.u32 %v452_v5, 16  ;;  %v4428_v5 = vld [vmem:[%s4069_s16 + $0x5c] sm:$0x1] }
  0x63   : > { %3400 = vmatprep.mubr.msk.bf16.mxu1 %vm292_vm1, %v3036_v23  ;;  %v599_v41 = vrot.slane %v598_v24, 4  ;;  %v615_v43 = vshll.u32 %v4390_v0, 16  ;;  %v619_v44 = vshrl.u32 %v4390_v0, 16  ;;  %v594_v47 = vsel %vm4130_vm4, %v589_v30, %v593_v63  ;;  %v820_v30 = vld [vmem:[%s4069_s16 + $0xc] sm:$0xe] }
  0x64   : > { %v1744_v29 = vsel %vm4184_vm7, %v1742_v34, %v1743_v27  ;;  %v608_v49 = vrot.slane %v606_v35, 4  ;;  %v625_v51 = vshll.u32 %v4401_v13, 16  ;;  %v611_v59 = vrot.slane %v609_v42, 5 }
  0x65   : > { %v604_v56 = vsel %vm4130_vm4, %v599_v41, %v603_v26  ;;  %v3171_v57 = vcombine.low %v1741_v31, %v1744_v29  ;;  %v617_v12 = vrot.slane %v615_v43, 5  ;;  %v621_v61 = vrot.slane %v619_v44, 4  ;;  %v3774_v44 = vld [vmem:[%s4069_s16 + $0x24] sm:$0xff]  }
  0x66   : > { %v3037_v14 = vcombine.low %v594_v47, %v604_v56  ;;  %v627_v62 = vrot.slane %v625_v51, 5  ;;  %v630_v2 = vshrl.u32 %v455_v28, 16  ;;  %v612_v63 = vor.u32 %v611_v59, %v608_v49  ;;  %v821_v47 = vld [vmem:[%s4069_s16 + $0x18] sm:$0xe]  ;;  %v3775_v56 = vld [vmem:[%s4069_s16 + $0x30] sm:$0xff]  }
  0x67   : > { %3477 = vmatmul.mubr.msk.bf16.gmra.mrb[12].mxu0 %vm292_vm1, %v3171_v57  ;;  %v633_v3 = vshll.u32 %v455_v28, 16  ;;  %v639_v4 = vshll.u32 %v4418_v46, 16  ;;  %v643_v19 = vshrl.u32 %v4418_v46, 16  ;;  %v622_v17 = vor.u32 %v621_v61, %v617_v12  ;;  %v822_v59 = vld [vmem:[%s4069_s16 + $0x24] sm:$0xe] }
  0x68   : > { %3401 = vmatmul.mubr.msk.bf16.gmra.mrb[8].mxu1 %vm292_vm1, %v3037_v14  ;;  %3482 = vmatprep.mubr.msk.bf16.mxu0 %vm292_vm1, %v3773_v37  ;;  %v632_v20 = vrot.slane %v630_v2, 4  ;;  %v649_v22 = vshll.u32 %v4428_v5, 16  ;;  %v2377_v23 = vsel %vm317_vm0, %v4338_v1, 0  ;;  %v613_v24 = vrot.slane %v612_v63, 4 }
  0x69   : > { %v635_v26 = vrot.slane %v633_v3, 5  ;;  %v641_v27 = vrot.slane %v639_v4, 5  ;;  %v645_v28 = vrot.slane %v643_v19, 4  ;;  %v623_v31 = vrot.slane %v622_v17, 4  ;;  %v823_v17 = vld [vmem:[%s4069_s16 + $0x30] sm:$0xe] }
  0x6a   : > { %v651_v34 = vrot.slane %v649_v22, 5  ;;  %v3048_v35 = vrot.slane %v819_v16, 9  ;;  %v856_v37 = vrot.slane %v4215_v18, 5  ;;  %v618_v41 = vsel %vm4130_vm4, %v613_v24, %v617_v12  ;;  %v824_v24 = vld [vmem:[%s4069_s16 + $0x3c] sm:$0xe] }
  0x6b   : > { %v636_v42 = vor.u32 %v635_v26, %v632_v20  ;;  %v646_v43 = vor.u32 %v645_v28, %v641_v27  ;;  %v859_v1 = vrot.slane %v4218_v58, 5  ;;  %v628_v29 = vsel %vm4130_vm4, %v623_v31, %v627_v62  ;;  %v4456_v58 = vld [vmem:[%s4941_s2 + $0x10] sm:$0x3] }
  0x6c   : > { %v857_v49 = vsel %vm4184_vm7, %v3048_v35, %v856_v37  ;;  %v858_v51 = vrot.slane %v856_v37, 4  ;;  %v3049_v57 = vrot.slane %v820_v30, 9  ;;  %v3038_v18 = vcombine.low %v618_v41, %v628_v29  ;;  %v3776_v35 = vld [vmem:[%s4069_s16 + $0x3c] sm:$0xff]  }
  0x6d   : > { %v637_v14 = vrot.slane %v636_v42, 4  ;;  %v647_v12 = vrot.slane %v646_v43, 4  ;;  %v863_v61 = vrot.slane %v4246_v9, 5  ;;  %v866_v2 = vrot.slane %v4253_v21, 5  ;;  %v3213_v42 = vld [vmem:[%s4069_s16 + $0x18] sm:$0xf] }
  0x6e   : > { %v860_v62 = vsel %vm4184_vm7, %v858_v51, %v859_v1  ;;  %v4463_v63 = vsel %vm317_vm0, %v4395_v53, 0  ;;  %v3050_v3 = vrot.slane %v821_v47, 9  ;;  %3404 = vmatprep.mubr.msk.bf16.mxu1 %vm292_vm1, %v3038_v18  ;;  %v870_v20 = vrot.slane %v4271_v50, 5  ;;  %v4520_v18 = vld [vmem:[%s4069_s16 + $0x20] sm:$0x1] }
  0x6f   : > { %v642_v9 = vsel %vm4130_vm4, %v637_v14, %v641_v27  ;;  %v652_v4 = vsel %vm4130_vm4, %v647_v12, %v651_v34  ;;  %3483 = vmatmul.mubr.msk.bf16.vlgmr.msra.gmra.mrb[0].mxu0 %vm292_vm1, %v3774_v44  ;;  %v3057_v19 = vcombine.low %v857_v49, %v860_v62  ;;  %v865_v16 = vrot.slane %v863_v61, 4  ;;  %v825_v34 = vld [vmem:[%s4069_s16 + $0x48] sm:$0xe]  ;;  %v4503_v49 = vld [vmem:[%s4069_s16 + $0x1c] sm:$0xf] }
  0x70   : > { %v3039_v21 = vcombine.low %v642_v9, %v652_v4  ;;  %3499 = vmatpush3.bf16.msra.mxu0 %v2377_v23  ;;  %3486 = vmatprep.mubr.msk.bf16.mxu0 %vm292_vm1, %v3775_v56  ;;  %v864_v53 = vsel %vm4184_vm7, %v3049_v57, %v863_v61  ;;  %v873_v22 = vrot.slane %v4275_v11, 5  ;;  %v3051_v27 = vrot.slane %v822_v59, 9  ;;  %v3777_v44 = vld [vmem:[%s4069_s16 + $0x48] sm:$0xff]  }
  0x71   : > { %v867_v26 = vsel %vm4184_vm7, %v865_v16, %v866_v2  ;;  %v877_v28 = vrot.slane %v4300_v10, 5  ;;  %v880_v23 = vrot.slane %v4305_v25, 5  ;;  %3689 = vmatprep.subr.msk.bf16.mxu0 %vm317_vm0, %v4456_v58  ;;  %v871_v50 = vsel %vm4184_vm7, %v3050_v3, %v870_v20  ;;  %v826_v2 = vld [vmem:[%s4069_s16 + $0x54] sm:$0xe] }
  0x72   : > { %3405 = vmatmul.mubr.msk.bf16.gmra.mrb[12].mxu1 %vm292_vm1, %v3039_v21  ;;  %v3058_v30 = vcombine.low %v864_v53, %v867_v26  ;;  %v872_v11 = vrot.slane %v870_v20, 4  ;;  %v3052_v31 = vrot.slane %v823_v17, 9  ;;  %v884_v37 = vrot.slane %v4326_v33, 5  ;;  %v3778_v16 = vld [vmem:[%s4069_s16 + $0x54] sm:$0xff]   ;;  %v3216_v53 = vld [vmem:[%s4069_s16 + $0x24] sm:$0xf] }
  0x73   : > { %3410 = vmatprep.mubr.msk.bf16.mxu1 %vm292_vm1, %v3057_v19  ;;  %v4492_v10 = vsel %vm4184_vm7, %v3051_v27, %v877_v28  ;;  %v879_v25 = vrot.slane %v877_v28, 4  ;;  %v887_v41 = vrot.slane %v4330_v32, 5  ;;  %v3053_v1 = vrot.slane %v824_v24, 9  ;;  %v4550_v27 = vld [vmem:[%s4069_s16 + $0x28] sm:$0xf]  ;;  %v3779_v28 = vld [vmem:[%s4069_s16 + $0x60] sm:$0xff]  }
  0x74   : > { %v874_v43 = vsel %vm4184_vm7, %v872_v11, %v873_v22  ;;  %v891_v47 = vrot.slane %v4367_v55, 5  ;;  %v894_v29 = vrot.slane %v4370_v39, 5  ;;  %v4511_v32 = vsel %vm4184_vm7, %v3052_v31, %v884_v37 }
  0x75   : > { %v3059_v51 = vcombine.low %v871_v50, %v874_v43  ;;  %v4507_v33 = vsel %vm4184_vm7, %v879_v25, %v880_v23  ;;  %v886_v56 = vrot.slane %v884_v37, 4  ;;  %v3054_v59 = vrot.slane %v825_v34, 9  ;;  %v4564_v25 = vld [vmem:[%s4069_s16 + $0x2c] sm:$0x1]  ;;  %v3853_v37 = vld [vmem:[%s4941_s2 + $0x8] sm:$0x3] }
  0x76   : > { %v3060_v57 = vcombine.low %v4492_v10, %v4507_v33  ;;  %v4517_v55 = vsel %vm4184_vm7, %v3053_v1, %v891_v47  ;;  %v893_v39 = vrot.slane %v891_v47, 4  ;;  %v898_v12 = vrot.slane %v4390_v0, 5  ;;  %v3219_v43 = vld [vmem:[%s4069_s16 + $0x30] sm:$0xf] }
  0x77   : > { %3487 = vmatmul.mubr.msk.bf16.gmra.mrb[4].mxu0 %vm292_vm1, %v3776_v35  ;;  %v4525_v14 = vsel %vm4184_vm7, %v886_v56, %v887_v41  ;;  %v901_v61 = vrot.slane %v4401_v13, 5  ;;  %v2135_v62 = vshrl.u32 %v3213_v42, 16  ;;  %v2138_v4 = vshll.u32 %v3213_v42, 16 }
  0x78   : > { %3490 = vmatprep.mubr.msk.bf16.mxu0 %vm292_vm1, %v3777_v44  ;;  %v3061_v3 = vcombine.low %v4511_v32, %v4525_v14  ;;  %v4535_v9 = vsel %vm4184_vm7, %v893_v39, %v894_v29  ;;  %v2144_v19 = vshll.u32 %v4503_v49, 16  ;;  %v4543_v13 = vsel %vm4184_vm7, %v3054_v59, %v898_v12 }
  0x79   : > { %v3062_v0 = vcombine.low %v4517_v55, %v4535_v9  ;;  %v900_v17 = vrot.slane %v898_v12, 4  ;;  %v2137_v21 = vrot.slane %v2135_v62, 4  ;;  %v2140_v20 = vrot.slane %v2138_v4, 5 }
  0x7a   : > { %3411 = vmatmul.mubr.msk.bf16.vlgmr.msra.gmra.mrb[0].mxu1 %vm292_vm1, %v3058_v30  ;;  %v2146_v22 = vrot.slane %v2144_v19, 5  ;;  %v2148_v24 = vshrl.u32 %v4503_v49, 16  ;;  %v2154_v26 = vshll.u32 %v4520_v18, 16  ;;  %v3055_v30 = vrot.slane %v826_v2, 9  ;;  %v4592_v19 = vld [vmem:[%s4069_s16 + $0x38] sm:$0x1] }
  0x7b   : > { %3427 = vmatpush3.bf16.msra.mxu1 %v4463_v63  ;;  %3414 = vmatprep.mubr.msk.bf16.mxu1 %vm292_vm1, %v3059_v51  ;;  %v4557_v23 = vsel %vm4184_vm7, %v900_v17, %v901_v61  ;;  %v905_v50 = vrot.slane %v4418_v46, 5  ;;  %v908_v11 = vrot.slane %v4428_v5, 5  ;;  %v2141_v34 = vor.u32 %v2140_v20, %v2137_v21  ;;  %v4578_v51 = vld [vmem:[%s4069_s16 + $0x34] sm:$0xf]  ;;  %v3222_v20 = vld [vmem:[%s4069_s16 + $0x3c] sm:$0xf] }
  0x7c   : > { %v3063_v31 = vcombine.low %v4543_v13, %v4557_v23  ;;  %v2150_v35 = vrot.slane %v2148_v24, 4  ;;  %v2156_v63 = vrot.slane %v2154_v26, 5  ;;  %3685 = vmatprep.subr.msk.bf16.mxu1 %vm317_vm0, %v3853_v37  ;;  %v2159_v41 = vshrl.u32 %v3216_v53, 16  ;;  %v4617_v37 = vld [vmem:[%s4069_s16 + $0x44] sm:$0x1] }
  0x7d   : > { %v4572_v46 = vsel %vm4184_vm7, %v3055_v30, %v905_v50  ;;  %v907_v5 = vrot.slane %v905_v50, 4  ;;  %v2162_v42 = vshll.u32 %v3216_v53, 16  ;;  %v2142_v44 = vrot.slane %v2141_v34, 4  ;;  %v4608_v50 = vld [vmem:[%s4069_s16 + $0x40] sm:$0xf] }
  0x7e   : > { %v2151_v1 = vor.u32 %v2150_v35, %v2146_v22  ;;  %v2168_v47 = vshll.u32 %v4550_v27, 16  ;;  %v2172_v29 = vshrl.u32 %v4550_v27, 16  ;;  %v2161_v39 = vrot.slane %v2159_v41, 4 }
  0x7f   : > { %3491 = vmatmul.mubr.msk.bf16.gmra.mrb[8].mxu0 %vm292_vm1, %v3778_v16  ;;  %v4583_v56 = vsel %vm4184_vm7, %v907_v5, %v908_v11  ;;  %v2164_v59 = vrot.slane %v2162_v42, 5  ;;  %v2178_v12 = vshll.u32 %v4564_v25, 16  ;;  %v2147_v61 = vsel %vm4130_vm4, %v2142_v44, %v2146_v22  ;;  %v3780_v22 = vld [vmem:[%s4069_s16 + $0x6c] sm:$0xff]   ;;  %v3225_v5 = vld [vmem:[%s4069_s16 + $0x48] sm:$0xf] }
  0x80   : > { %3494 = vmatprep.mubr.msk.bf16.mxu0 %vm292_vm1, %v3779_v28  ;;  %v2152_v62 = vrot.slane %v2151_v1, 4  ;;  %v3064_v2 = vcombine.low %v4572_v46, %v4583_v56  ;;  %v2170_v4 = vrot.slane %v2168_v47, 5  ;;  %v2174_v17 = vrot.slane %v2172_v29, 4 }
  0x81   : > { %v2165_v16 = vor.u32 %v2164_v59, %v2161_v39  ;;  %v2180_v21 = vrot.slane %v2178_v12, 5  ;;  %v4596_v53 = vsel %vm317_vm0, %v4456_v58, 0  ;;  %v2183_v26 = vshrl.u32 %v3219_v43, 16  ;;  %v4628_v12 = vld [vmem:[%s4069_s16 + $0x4c] sm:$0xf] }
  0x82   : > { %3415 = vmatmul.mubr.msk.bf16.gmra.mrb[4].mxu1 %vm292_vm1, %v3060_v57  ;;  %v2157_v24 = vsel %vm4130_vm4, %v2152_v62, %v2156_v63  ;;  %v2186_v28 = vshll.u32 %v3219_v43, 16  ;;  %v2192_v30 = vshll.u32 %v4578_v51, 16  ;;  %v2175_v33 = vor.u32 %v2174_v17, %v2170_v4 }
  0x83   : > { %3418 = vmatprep.mubr.msk.bf16.mxu1 %vm292_vm1, %v3061_v3  ;;  %v3238_v58 = vcombine.low %v2147_v61, %v2157_v24  ;;  %v2166_v10 = vrot.slane %v2165_v16, 4  ;;  %v2196_v57 = vshrl.u32 %v4578_v51, 16  ;;  %v2185_v11 = vrot.slane %v2183_v26, 4 }
  0x84   : > { %v2188_v34 = vrot.slane %v2186_v28, 5  ;;  %v2194_v35 = vrot.slane %v2192_v30, 5  ;;  %v2202_v63 = vshll.u32 %v4592_v19, 16  ;;  %v2176_v32 = vrot.slane %v2175_v33, 4  ;;  %v4639_v28 = vld [vmem:[%s4069_s16 + $0x50] sm:$0x1] }
  0x85   : > { %v2171_v41 = vsel %vm4130_vm4, %v2166_v10, %v2170_v4  ;;  %v2198_v14 = vrot.slane %v2196_v57, 4  ;;  %v2207_v3 = vshrl.u32 %v3222_v20, 16  ;;  %v2210_v44 = vshll.u32 %v3222_v20, 16  ;;  %v3228_v10 = vld [vmem:[%s4069_s16 + $0x54] sm:$0xf] }
  0x86   : > { %v2189_v42 = vor.u32 %v2188_v34, %v2185_v11  ;;  %v2204_v43 = vrot.slane %v2202_v63, 5  ;;  %v2216_v1 = vshll.u32 %v4608_v50, 16  ;;  %v2181_v47 = vsel %vm4130_vm4, %v2176_v32, %v2180_v21  ;;  %v4650_v57 = vld [vmem:[%s4069_s16 + $0x58] sm:$0xf] }
  0x87   : > { %3495 = vmatmul.mubr.msk.bf16.gmra.mrb[12].mxu0 %vm292_vm1, %v3780_v22  ;;  %v2199_v29 = vor.u32 %v2198_v14, %v2194_v35  ;;  %v2209_v39 = vrot.slane %v2207_v3, 4  ;;  %v2220_v59 = vshrl.u32 %v4608_v50, 16  ;;  %v3239_v61 = vcombine.low %v2171_v41, %v2181_v47  ;;  %v4657_v14 = vld [vmem:[%s4069_s16 + $0x5c] sm:$0x1] }
  0x88   : > { %3500 = vmatprep.mubr.msk.bf16.mxu0 %vm292_vm1, %v3238_v58  ;;  %v2190_v62 = vrot.slane %v2189_v42, 4  ;;  %v2212_v4 = vrot.slane %v2210_v44, 5  ;;  %v2218_v16 = vrot.slane %v2216_v1, 5  ;;  %v2226_v22 = vshll.u32 %v4617_v37, 16  ;;  %v3781_v44 = vld [vmem:[%s4069_s16 + $0xc] sm:$0xff]  }
  0x89   : > { %v2200_v17 = vrot.slane %v2199_v29, 4  ;;  %v2222_v20 = vrot.slane %v2220_v59, 4  ;;  %v2231_v21 = vshrl.u32 %v3225_v5, 16  ;;  %v2234_v30 = vshll.u32 %v3225_v5, 16  ;;  %v4666_v59 = vld [vmem:[%s4069_s16 + $0x64] sm:$0xf] }
  0x8a   : > { %3419 = vmatmul.mubr.msk.bf16.gmra.mrb[8].mxu1 %vm292_vm1, %v3062_v0  ;;  %v2195_v24 = vsel %vm4130_vm4, %v2190_v62, %v2194_v35  ;;  %v2213_v26 = vor.u32 %v2212_v4, %v2209_v39  ;;  %v2240_v58 = vshll.u32 %v4628_v12, 16  ;;  %v2228_v0 = vrot.slane %v2226_v22, 5 }
  0x8b   : > { %3422 = vmatprep.mubr.msk.bf16.mxu1 %vm292_vm1, %v3063_v31  ;;  %v2205_v55 = vsel %vm4130_vm4, %v2200_v17, %v2204_v43  ;;  %v2223_v9 = vor.u32 %v2222_v20, %v2218_v16  ;;  %v2233_v33 = vrot.slane %v2231_v21, 4  ;;  %v2236_v35 = vrot.slane %v2234_v30, 5  ;;  %v3231_v43 = vld [vmem:[%s4069_s16 + $0x60] sm:$0xf] }
  0x8c   : > { %v3240_v11 = vcombine.low %v2195_v24, %v2205_v55  ;;  %v2214_v34 = vrot.slane %v2213_v26, 4  ;;  %v2242_v63 = vrot.slane %v2240_v58, 5  ;;  %v2244_v13 = vshrl.u32 %v4628_v12, 16  ;;  %v4679_v26 = vld [vmem:[%s4069_s16 + $0x68] sm:$0x1] }
  0x8d   : > { %v2224_v5 = vrot.slane %v2223_v9, 4  ;;  %v2250_v23 = vshll.u32 %v4639_v28, 16  ;;  %v2255_v31 = vshrl.u32 %v3228_v10, 16  ;;  %v2237_v32 = vor.u32 %v2236_v35, %v2233_v33 }
  0x8e   : > { %v2219_v41 = vsel %vm4130_vm4, %v2214_v34, %v2218_v16  ;;  %v2258_v3 = vshll.u32 %v3228_v10, 16  ;;  %v2264_v42 = vshll.u32 %v4650_v57, 16  ;;  %v2246_v47 = vrot.slane %v2244_v13, 4  ;;  %v3234_v10 = vld [vmem:[%s4069_s16 + $0x6c] sm:$0xf] }
  0x8f   : > { %3501 = vmatmul.mubr.msk.bf16.vlgmr.msra.gmra.mrb[0].mxu0 %vm292_vm1, %v3239_v61  ;;  %v2229_v1 = vsel %vm4130_vm4, %v2224_v5, %v2228_v0  ;;  %v2252_v29 = vrot.slane %v2250_v23, 5  ;;  %v2257_v39 = vrot.slane %v2255_v31, 4  ;;  %v2238_v4 = vrot.slane %v2237_v32, 4  ;;  %v4689_v5 = vld [vmem:[%s4069_s16 + $0x70] sm:$0xf]  ;;  %v3782_v23 = vld [vmem:[%s4069_s16 + $0x18] sm:$0xff]  }
  0x90   : > { %3517 = vmatpush3.bf16.msra.mxu0 %v4596_v53  ;;  %3504 = vmatprep.mubr.msk.bf16.mxu0 %vm292_vm1, %v3240_v11  ;;  %v3241_v62 = vcombine.low %v2219_v41, %v2229_v1  ;;  %v2260_v16 = vrot.slane %v2258_v3, 5  ;;  %v2266_v17 = vrot.slane %v2264_v42, 5  ;;  %v2247_v61 = vor.u32 %v2246_v47, %v2242_v63  ;;  %v3783_v31 = vld [vmem:[%s4069_s16 + $0x24] sm:$0xff]  }
  0x91   : > { %v2268_v20 = vshrl.u32 %v4650_v57, 16  ;;  %v2274_v22 = vshll.u32 %v4657_v14, 16  ;;  %v2279_v21 = vshrl.u32 %v3231_v43, 16  ;;  %v2243_v53 = vsel %vm4130_vm4, %v2238_v4, %v2242_v63 }
  0x92   : > { %3423 = vmatmul.mubr.msk.bf16.gmra.mrb[12].mxu1 %vm292_vm1, %v3064_v2  ;;  %v2261_v24 = vor.u32 %v2260_v16, %v2257_v39  ;;  %v2282_v30 = vshll.u32 %v3231_v43, 16  ;;  %v2288_v58 = vshll.u32 %v4666_v59, 16  ;;  %v2248_v55 = vrot.slane %v2247_v61, 4  ;;  %v4696_v43 = vld [vmem:[%s4069_s16 + $0x74] sm:$0x1] }
  0x93   : > { %3428 = vmatprep.mubr.msk.bf16.mxu1 %vm292_vm1, %v3781_v44  ;;  %v2270_v9 = vrot.slane %v2268_v20, 4  ;;  %v2276_v46 = vrot.slane %v2274_v22, 5  ;;  %v2281_v56 = vrot.slane %v2279_v21, 4  ;;  %v2292_v11 = vshrl.u32 %v4666_v59, 16  ;;  %v3254_v39 = vld [vmem:[%s4069_s16 + $0x18] sm:$0xe] }
  0x94   : > { %v2262_v2 = vrot.slane %v2261_v24, 4  ;;  %v2284_v0 = vrot.slane %v2282_v30, 5  ;;  %v2290_v33 = vrot.slane %v2288_v58, 5  ;;  %v2253_v34 = vsel %vm4130_vm4, %v2248_v55, %v2252_v29 }
  0x95   : > { %v2271_v35 = vor.u32 %v2270_v9, %v2266_v17  ;;  %v2298_v63 = vshll.u32 %v4679_v26, 16  ;;  %v2303_v13 = vshrl.u32 %v3234_v10, 16  ;;  %v3242_v41 = vcombine.low %v2243_v53, %v2253_v34  ;;  %v3255_v53 = vld [vmem:[%s4069_s16 + $0x24] sm:$0xe] }
  0x96   : > { %v2267_v32 = vsel %vm4130_vm4, %v2262_v2, %v2266_v17  ;;  %v2285_v3 = vor.u32 %v2284_v0, %v2281_v56  ;;  %v2294_v42 = vrot.slane %v2292_v11, 4  ;;  %v2306_v29 = vshll.u32 %v3234_v10, 16 }
  0x97   : > { %3505 = vmatmul.mubr.msk.bf16.gmra.mrb[4].mxu0 %vm292_vm1, %v3241_v62  ;;  %v2272_v44 = vrot.slane %v2271_v35, 4  ;;  %v2300_v1 = vrot.slane %v2298_v63, 5  ;;  %v2305_v47 = vrot.slane %v2303_v13, 4  ;;  %v2312_v61 = vshll.u32 %v4689_v5, 16  ;;  %v3784_v63 = vld [vmem:[%s4069_s16 + $0x30] sm:$0xff]  }
  0x98   : > { %3508 = vmatprep.mubr.msk.bf16.mxu0 %vm292_vm1, %v3242_v41  ;;  %v2286_v4 = vrot.slane %v2285_v3, 4  ;;  %v2295_v16 = vor.u32 %v2294_v42, %v2290_v33  ;;  %v2316_v17 = vshrl.u32 %v4689_v5, 16  ;;  %v4706_v20 = vrot.slane %v1436_v54, 4 }
  0x99   : > { %v2277_v62 = vsel %vm4130_vm4, %v2272_v44, %v2276_v46  ;;  %v2308_v22 = vrot.slane %v2306_v29, 5  ;;  %v2322_v21 = vshll.u32 %v4696_v43, 16  ;;  %v2314_v58 = vrot.slane %v2312_v61, 5  ;;  %v3121_v61 = vld [vmem:[%s4069_s16 + $0x48] sm:$0xf] }
  0x9a   : > { %3429 = vmatmul.mubr.msk.bf16.vlgmr.msra.gmra.mrb[0].mxu1 %vm292_vm1, %v3782_v23  ;;  %v2291_v24 = vsel %vm4130_vm4, %v2286_v4, %v2290_v33  ;;  %v2296_v30 = vrot.slane %v2295_v16, 4  ;;  %v3262_v10 = vrot.slane %v3254_v39, 9  ;;  %v3243_v40 = vcombine.low %v2267_v32, %v2277_v62  ;;  %v3118_v33 = vld [vmem:[%s4069_s16 + $0x3c] sm:$0xf] }
  0x9b   : > { %3535 = vmatpush3.bf16.msra.mxu1 %v4089_v6  ;;  %3432 = vmatprep.mubr.msk.bf16.mxu1 %vm292_vm1, %v3783_v31  ;;  %v2309_v54 = vor.u32 %v2308_v22, %v2305_v47  ;;  %v2318_v55 = vrot.slane %v2316_v17, 4  ;;  %v2526_v9 = vrot.slane %v4503_v49, 5  ;;  %v2529_v56 = vrot.slane %v4520_v18, 5  ;;  %v3785_v18 = vld [vmem:[%s4069_s16 + $0x3c] sm:$0xff]   ;;  %v3256_v47 = vld [vmem:[%s4069_s16 + $0x30] sm:$0xe] }
  0x9c   : > { %v2301_v46 = vsel %vm4130_vm4, %v2296_v30, %v2300_v1  ;;  %v3263_v2 = vrot.slane %v3255_v53, 9  ;;  %v2533_v0 = vrot.slane %v4550_v27, 5  ;;  %v2324_v35 = vrot.slane %v2322_v21, 5 }
  0x9d   : > { %v3244_v11 = vcombine.low %v2291_v24, %v2301_v46  ;;  %v2310_v34 = vrot.slane %v2309_v54, 4  ;;  %v2319_v6 = vor.u32 %v2318_v55, %v2314_v58  ;;  %v2527_v13 = vsel %vm4184_vm7, %v3262_v10, %v2526_v9  ;;  %v3786_v46 = vld [vmem:[%s4069_s16 + $0x48] sm:$0xff]  }
  0x9e   : > { %v2528_v49 = vrot.slane %v2526_v9, 4  ;;  %v2535_v23 = vrot.slane %v2533_v0, 4  ;;  %v2536_v31 = vrot.slane %v4564_v25, 5  ;;  %v1396_v32 = vshrl.u32 %v3118_v33, 16  ;;  %v3257_v9 = vld [vmem:[%s4069_s16 + $0x3c] sm:$0xe] }
  0x9f   : > { %3509 = vmatmul.mubr.msk.bf16.gmra.mrb[8].mxu0 %vm292_vm1, %v3243_v40  ;;  %v2315_v27 = vsel %vm4130_vm4, %v2310_v34, %v2314_v58  ;;  %v2320_v41 = vrot.slane %v2319_v6, 4  ;;  %v1399_v3 = vshll.u32 %v3118_v33, 16  ;;  %v4736_v44 = vsel %vm4184_vm7, %v3263_v2, %v2533_v0  ;;  %v3124_v6 = vld [vmem:[%s4069_s16 + $0x54] sm:$0xf] }
  0xa0   : > { %3512 = vmatprep.mubr.msk.bf16.mxu0 %vm292_vm1, %v3244_v11  ;;  %v2530_v42 = vsel %vm4184_vm7, %v2528_v49, %v2529_v56  ;;  %v1405_v25 = vshll.u32 %v4281_v48, 16  ;;  %v1409_v1 = vshrl.u32 %v4281_v48, 16  ;;  %v4745_v4 = vsel %vm4184_vm7, %v2535_v23, %v2536_v31  ;;  %v3854_v48 = vld [vmem:[%s4069_s16 + $0x44] sm:$0x1] }
  0xa1   : > { %v2325_v29 = vsel %vm4130_vm4, %v2320_v41, %v2324_v35  ;;  %v3271_v39 = vcombine.low %v2527_v13, %v2530_v42  ;;  %v1398_v16 = vrot.slane %v1396_v32, 4  ;;  %v1401_v62 = vrot.slane %v1399_v3, 5  ;;  %v3787_v35 = vld [vmem:[%s4069_s16 + $0x54] sm:$0xff]  }
  0xa2   : > { %3433 = vmatmul.mubr.msk.bf16.gmra.mrb[4].mxu1 %vm292_vm1, %v3784_v63  ;;  %v3245_v17 = vcombine.low %v2315_v27, %v2325_v29  ;;  %v1407_v22 = vrot.slane %v1405_v25, 5  ;;  %v1411_v21 = vrot.slane %v1409_v1, 4  ;;  %v1415_v53 = vshll.u32 %v3854_v48, 16  ;;  %v3258_v27 = vld [vmem:[%s4069_s16 + $0x48] sm:$0xe] }
  0xa3   : > { %3436 = vmatprep.mubr.msk.bf16.mxu1 %vm292_vm1, %v3785_v18  ;;  %v3264_v24 = vrot.slane %v3256_v47, 9  ;;  %v2540_v30 = vrot.slane %v4578_v51, 5  ;;  %v2543_v58 = vrot.slane %v4592_v19, 5  ;;  %v1402_v10 = vor.u32 %v1401_v62, %v1398_v16 }
  0xa4   : > { %v1412_v40 = vor.u32 %v1411_v21, %v1407_v22  ;;  %v1420_v54 = vshrl.u32 %v3121_v61, 16  ;;  %v1423_v55 = vshll.u32 %v3121_v61, 16  ;;  %v1417_v56 = vrot.slane %v1415_v53, 5  ;;  %v3788_v53 = vld [vmem:[%s4069_s16 + $0x60] sm:$0xff]  }
  0xa5   : > { %v2541_v2 = vsel %vm4184_vm7, %v3264_v24, %v2540_v30  ;;  %v2542_v0 = vrot.slane %v2540_v30, 4  ;;  %v1442_v51 = vsel %vm4130_vm4, %v4706_v20, %v4353_v15  ;;  %v1403_v33 = vrot.slane %v1402_v10, 4 }
  0xa6   : > { %v1413_v19 = vrot.slane %v1412_v40, 4  ;;  %v1422_v11 = vrot.slane %v1420_v54, 4  ;;  %v1425_v34 = vrot.slane %v1423_v55, 5  ;;  %v3272_v63 = vcombine.low %v4736_v44, %v4745_v4  ;;  %v3127_v4 = vld [vmem:[%s4069_s16 + $0x60] sm:$0xf] }
  0xa7   : > { %3513 = vmatmul.mubr.msk.bf16.gmra.mrb[12].mxu0 %vm292_vm1, %v3245_v17  ;;  %v2544_v13 = vsel %vm4184_vm7, %v2542_v0, %v2543_v58  ;;  %v3265_v49 = vrot.slane %v3257_v9, 9  ;;  %v2547_v23 = vrot.slane %v4608_v50, 5  ;;  %v1408_v15 = vsel %vm4130_vm4, %v1403_v33, %v1407_v22  ;;  %v3259_v0 = vld [vmem:[%s4069_s16 + $0x54] sm:$0xe] }
  0xa8   : > { %3518 = vmatprep.mubr.msk.bf16.mxu0 %vm292_vm1, %v3271_v39  ;;  %v1418_v20 = vsel %vm4130_vm4, %v1413_v19, %v1417_v56  ;;  %v1426_v31 = vor.u32 %v1425_v34, %v1422_v11  ;;  %v2550_v18 = vrot.slane %v4617_v37, 5  ;;  %v3273_v32 = vcombine.low %v2541_v2, %v2544_v13  ;;  %v3260_v11 = vld [vmem:[%s4069_s16 + $0x60] sm:$0xe] }
  0xa9   : > { %v3135_v41 = vcombine.low %v1408_v15, %v1418_v20  ;;  %v2549_v3 = vrot.slane %v2547_v23, 4  ;;  %v1444_v42 = vshrl.u32 %v3124_v6, 16  ;;  %v1447_v44 = vshll.u32 %v3124_v6, 16 }
  0xaa   : > { %3437 = vmatmul.mubr.msk.bf16.gmra.mrb[8].mxu1 %vm292_vm1, %v3786_v46  ;;  %v1427_v50 = vrot.slane %v1426_v31, 4  ;;  %v1453_v25 = vshll.u32 %v4345_v7, 16  ;;  %v1457_v1 = vshrl.u32 %v4345_v7, 16  ;;  %v2548_v37 = vsel %vm4184_vm7, %v3265_v49, %v2547_v23 }
  0xab   : > { %3440 = vmatprep.mubr.msk.bf16.mxu1 %vm292_vm1, %v3787_v35  ;;  %v1446_v47 = vrot.slane %v1444_v42, 4  ;;  %v1463_v29 = vshll.u32 %v4348_v8, 16  ;;  %v3266_v39 = vrot.slane %v3258_v27, 9  ;;  %v2551_v61 = vsel %vm4184_vm7, %v2549_v3, %v2550_v18 }
  0xac   : > { %v1432_v16 = vsel %vm4130_vm4, %v1427_v50, %v4323_v60  ;;  %v1449_v17 = vrot.slane %v1447_v44, 5  ;;  %v1455_v62 = vrot.slane %v1453_v25, 5  ;;  %v1459_v22 = vrot.slane %v1457_v1, 4  ;;  %v3261_v50 = vld [vmem:[%s4069_s16 + $0x6c] sm:$0xe] }
  0xad   : > { %v3136_v7 = vcombine.low %v1432_v16, %v1442_v51  ;;  %v1465_v21 = vrot.slane %v1463_v29, 5  ;;  %v2554_v48 = vrot.slane %v4628_v12, 5  ;;  %v2557_v8 = vrot.slane %v4639_v28, 5 }
  0xae   : > { %v1450_v24 = vor.u32 %v1449_v17, %v1446_v47  ;;  %v1468_v30 = vshrl.u32 %v3127_v4, 16  ;;  %v1471_v58 = vshll.u32 %v3127_v4, 16  ;;  %v1460_v60 = vor.u32 %v1459_v22, %v1455_v62 }
  0xaf   : > { %3519 = vmatmul.mubr.msk.bf16.vlgmr.msra.gmra.mrb[0].mxu0 %vm292_vm1, %v3272_v63  ;;  %v2555_v10 = vsel %vm4184_vm7, %v3266_v39, %v2554_v48  ;;  %v2556_v40 = vrot.slane %v2554_v48, 4  ;;  %v1477_v54 = vshll.u32 %v4375_v45, 16  ;;  %v1481_v28 = vshrl.u32 %v4375_v45, 16 }
  0xb0   : > { %3522 = vmatprep.mubr.msk.bf16.mxu0 %vm292_vm1, %v3273_v32  ;;  %v1451_v12 = vrot.slane %v1450_v24, 4  ;;  %v1470_v55 = vrot.slane %v1468_v30, 4  ;;  %v1473_v9 = vrot.slane %v1471_v58, 5  ;;  %v1461_v46 = vrot.slane %v1460_v60, 4 }
  0xb1   : > { %v2558_v56 = vsel %vm4184_vm7, %v2556_v40, %v2557_v8  ;;  %v1479_v2 = vrot.slane %v1477_v54, 5  ;;  %v3274_v51 = vcombine.low %v2548_v37, %v2551_v61  ;;  %v1483_v33 = vrot.slane %v1481_v28, 4 }
  0xb2   : > { %3441 = vmatmul.mubr.msk.bf16.gmra.mrb[12].mxu1 %vm292_vm1, %v3788_v53  ;;  %v1487_v19 = vshll.u32 %v4381_v52, 16  ;;  %v1456_v34 = vsel %vm4130_vm4, %v1451_v12, %v1455_v62  ;;  %v3275_v6 = vcombine.low %v2555_v10, %v2558_v56  ;;  %v1474_v45 = vor.u32 %v1473_v9, %v1470_v55  ;;  %v4843_v53 = vld [vmem:[%s4942_s3] ss:$0 sm:$0xff] }
  0xb3   : > { %3454 = vmatprep.mubr.msk.bf16.mxu1 %vm292_vm1, %v3135_v41  ;;  %v2561_v35 = vrot.slane %v4650_v57, 5  ;;  %v1466_v63 = vsel %vm4130_vm4, %v1461_v46, %v1465_v21  ;;  %v1484_v13 = vor.u32 %v1483_v33, %v1479_v2  ;;  %v3267_v49 = vrot.slane %v3259_v0, 9 }
  0xb4   : > { %v2564_v23 = vrot.slane %v4657_v14, 5  ;;  %v3268_v52 = vrot.slane %v3260_v11, 9  ;;  %v2568_v20 = vrot.slane %v4666_v59, 5  ;;  %v1489_v31 = vrot.slane %v1487_v19, 5 }
  0xb5   : > { %v2563_v15 = vrot.slane %v2561_v35, 4  ;;  %v2571_v18 = vrot.slane %v4679_v26, 5  ;;  %v3137_v27 = vcombine.low %v1456_v34, %v1466_v63  ;;  %v1475_v41 = vrot.slane %v1474_v45, 4 }
  0xb6   : > { %v1485_v57 = vrot.slane %v1484_v13, 4  ;;  %v2570_v32 = vrot.slane %v2568_v20, 4  ;;  %v2562_v3 = vsel %vm4184_vm7, %v3267_v49, %v2561_v35  ;;  %v2575_v42 = vrot.slane %v4689_v5, 5 }
  0xb7   : > { %3523 = vmatmul.mubr.msk.bf16.gmra.mrb[4].mxu0 %vm292_vm1, %v3274_v51  ;;  %v2565_v14 = vsel %vm4184_vm7, %v2563_v15, %v2564_v23  ;;  %v2569_v59 = vsel %vm4184_vm7, %v3268_v52, %v2568_v20  ;;  %v1480_v44 = vsel %vm4130_vm4, %v1475_v41, %v1479_v2  ;;  %v3269_v5 = vrot.slane %v3261_v50, 9 }
  0xb8   : > { %3526 = vmatprep.mubr.msk.bf16.mxu0 %vm292_vm1, %v3275_v6  ;;  %v2572_v26 = vsel %vm4184_vm7, %v2570_v32, %v2571_v18  ;;  %v1490_v25 = vsel %vm4130_vm4, %v1485_v57, %v1489_v31  ;;  %v3276_v1 = vcombine.low %v2562_v3, %v2565_v14  ;;  %v2577_v47 = vrot.slane %v2575_v42, 4 }
  0xb9   : > { %v3277_v37 = vcombine.low %v2569_v59, %v2572_v26  ;;  %v2578_v29 = vrot.slane %v4696_v43, 5  ;;  %v3138_v39 = vcombine.low %v1480_v44, %v1490_v25  ;;  %v2576_v4 = vsel %vm4184_vm7, %v3269_v5, %v2575_v42 }
  0xba   : > { %3455 = vmatmul.mubr.msk.bf16.vlgmr.msra.gmra.mrb[8].mxu1 %vm292_vm1, %v3136_v7  ;;  %v4858_v5 = vstv %s2747_s30  ;;  %vm2904_vm9 = vcmask (!%p3287_p1), 1040384  }
  0xbb   : > { %3458 = vmatprep.mubr.msk.bf16.mxu1 %vm292_vm1, %v3137_v27  ;;  %v2579_v16 = vsel %vm4184_vm7, %v2577_v47, %v2578_v29 }
  0xbc   : > { %v3278_v36 = vcombine.low %v2576_v4, %v2579_v16 }
  0xbf   : > { %3527 = vmatmul.mubr.msk.bf16.gmra.mrb[8].mxu0 %vm292_vm1, %v3276_v1 }
  0xc0   : > { %3530 = vmatprep.mubr.msk.bf16.mxu0 %vm292_vm1, %v3277_v37 }
  0xc2   : > { %3459 = vmatmul.mubr.msk.bf16.gmra.mrb[12].mxu1 %vm292_vm1, %v3138_v39 }
  0xc7   : > { %3531 = vmatmul.mubr.msk.bf16.gmra.mrb[12].mxu0 %vm292_vm1, %v3278_v36 }
 0x16d   : > { %v3430_v61 = vpop.f32.mrb[0].mxu1 }
 0x16e   : > { %v1196_v17 = vpop.f32.mrb[1].mxu1  ;;  %v3536_v38 = vadd.f32 %v3430_v61, %v4843_v53 }
 0x16f   : > { %v3431_v62 = vpop.f32.mrb[2].mxu1  ;;  %v3538_v24 = vadd.f32 %v4843_v53, %v1196_v17 }
 0x170   : > { %v1199_v43 = vpop.f32.mrb[3].mxu1  ;;  %v3540_v30 = vadd.f32 %v3431_v62, %v4843_v53 }
 0x171   : > { %v3542_v10 = vadd.f32 %v4843_v53, %v1199_v43 }
 0x175   : > { %v3434_v7 = vpop.f32.mrb[4].mxu1 }
 0x176   : > { %v1212_v22 = vpop.f32.mrb[5].mxu1  ;;  %v3544_v33 = vadd.f32 %v3434_v7, %v4843_v53 }
 0x177   : > { %v3435_v21 = vpop.f32.mrb[6].mxu1  ;;  %v3546_v11 = vadd.f32 %v4843_v53, %v1212_v22 }
 0x178   : > { %v1215_v48 = vpop.f32.mrb[7].mxu1  ;;  %v3548_v45 = vadd.f32 %v3435_v21, %v4843_v53 }
 0x179   : > { %v3550_v13 = vadd.f32 %v4843_v53, %v1215_v48 }
 0x182   : > { %v3520_v8 = vpop.f32.mrb[0].mxu0 }
 0x183   : > { %v3537_v58 = vadd.f32 %v3536_v38, %v3520_v8  ;;  %v2667_v60 = vpop.f32.mrb[1].mxu0 }
 0x184   : > { %v3539_v40 = vadd.f32 %v3538_v24, %v2667_v60  ;;  %v3521_v54 = vpop.f32.mrb[2].mxu0 }
 0x185   : > { %v2750_v12 = vmax.f32 %v3537_v58, 1e-06  ;;  %v3541_v55 = vadd.f32 %v3540_v30, %v3521_v54  ;;  %v2670_v9 = vpop.f32.mrb[3].mxu0 }
 0x186   : > { %v2748_v28 = vmax.f32 %v3539_v40, 1e-06  ;;  %v3543_v46 = vadd.f32 %v3542_v10, %v2670_v9 }
 0x187   : > { %v2766_v56 = vmin.f32 %v2750_v12, 10000.0  ;;  %v2751_v2 = vmax.f32 %v3541_v55, 1e-06 }
 0x188   : > { %v2764_v0 = vmin.f32 %v2748_v28, 10000.0  ;;  %v2749_v51 = vmax.f32 %v3543_v46, 1e-06 }
 0x189   : > { %3789 = vlog2.f32 %v2766_v56  ;;  %v2767_v19 = vmin.f32 %v2751_v2, 10000.0 }
 0x18a   : > { %3791 = vlog2.f32 %v2764_v0  ;;  %v2765_v34 = vmin.f32 %v2749_v51, 10000.0  ;;  %v3524_v6 = vpop.f32.mrb[4].mxu0 }
 0x18b   : > { %3793 = vlog2.f32 %v2767_v19  ;;  %v3545_v35 = vadd.f32 %v3544_v33, %v3524_v6  ;;  %v2683_v63 = vpop.f32.mrb[5].mxu0 }
 0x18c   : > { %3795 = vlog2.f32 %v2765_v34  ;;  %v3547_v49 = vadd.f32 %v3546_v11, %v2683_v63  ;;  %v3525_v23 = vpop.f32.mrb[6].mxu0 }
 0x18d   : > { %v3456_v15 = vpop.f32.mrb[8].mxu1  ;;  %v2754_v52 = vmax.f32 %v3545_v35, 1e-06  ;;  %v3549_v20 = vadd.f32 %v3548_v45, %v3525_v23  ;;  %v2686_v31 = vpop.f32.mrb[7].mxu0 }
 0x18e   : > { %v1610_v18 = vpop.f32.mrb[9].mxu1  ;;  %v2752_v27 = vmax.f32 %v3547_v49, 1e-06  ;;  %v3551_v41 = vadd.f32 %v3550_v13, %v2686_v31  ;;  %v3552_v26 = vadd.f32 %v3456_v15, %v4843_v53 }
 0x18f   : > { %v2770_v57 = vmin.f32 %v2754_v52, 10000.0  ;;  %v3457_v32 = vpop.f32.mrb[10].mxu1  ;;  %v2755_v3 = vmax.f32 %v3549_v20, 1e-06  ;;  %v3554_v44 = vadd.f32 %v4843_v53, %v1610_v18 }
 0x190   : > { %v2768_v14 = vmin.f32 %v2752_v27, 10000.0  ;;  %v1613_v42 = vpop.f32.mrb[11].mxu1  ;;  %v2753_v59 = vmax.f32 %v3551_v41, 1e-06  ;;  %v3556_v47 = vadd.f32 %v3457_v32, %v4843_v53 }
 0x191   : > { %3797 = vlog2.f32 %v2770_v57  ;;  %v2771_v50 = vmin.f32 %v2755_v3, 10000.0  ;;  %v3558_v8 = vadd.f32 %v4843_v53, %v1613_v42 }
 0x192   : > { %3799 = vlog2.f32 %v2768_v14  ;;  %v2769_v25 = vmin.f32 %v2753_v59, 10000.0  ;;  %v3528_v1 = vpop.f32.mrb[8].mxu0 }
 0x193   : > { %v3790_v37 = vpop.eup %3789  ;;  %3801 = vlog2.f32 %v2771_v50  ;;  %v3553_v29 = vadd.f32 %v3552_v26, %v3528_v1  ;;  %v2699_v39 = vpop.f32.mrb[9].mxu0 }
 0x194   : > { %v3792_v4 = vpop.eup %3791  ;;  %v2785_v16 = vmul.f32 0.6931472, %v3790_v37  ;;  %3803 = vlog2.f32 %v2769_v25  ;;  %v3555_v36 = vadd.f32 %v3554_v44, %v2699_v39  ;;  %v3529_v61 = vpop.f32.mrb[10].mxu0 }
 0x195   : > { %v3794_v17 = vpop.eup %3793  ;;  %v2781_v62 = vmul.f32 0.6931472, %v3792_v4  ;;  %v3460_v43 = vpop.f32.mrb[12].mxu1  ;;  %v2758_v7 = vmax.f32 %v3553_v29, 1e-06  ;;  %v3557_v22 = vadd.f32 %v3556_v47, %v3529_v61 }
 0x196   : > { %v2702_v21 = vpop.f32.mrb[11].mxu0  ;;  %v3796_v48 = vpop.eup %3795  ;;  %v2815_v38 = vmul.f32 %v4858_v5, %v2785_v16  ;;  %v2787_v24 = vmul.f32 0.6931472, %v3794_v17  ;;  %v2756_v58 = vmax.f32 %v3555_v36, 1e-06  ;;  %v3560_v40 = vadd.f32 %v3460_v43, %v4843_v53 }
 0x197   : > { %v1626_v30 = vpop.f32.mrb[13].mxu1  ;;  %v2813_v60 = vmul.f32 %v4858_v5, %v2781_v62  ;;  %v2783_v10 = vmul.f32 0.6931472, %v3796_v48  ;;  %v2774_v54 = vmin.f32 %v2758_v7, 10000.0  ;;  %v2759_v51 = vmax.f32 %v3557_v22, 1e-06 }
 0x198   : > { %v3461_v12 = vpop.f32.mrb[14].mxu1  ;;  %v2833_v55 = vmul.f32 1.442695, %v2815_v38  ;;  %v2816_v9 = vmul.f32 %v4858_v5, %v2787_v24  ;;  %v3562_v28 = vadd.f32 %v4843_v53, %v1626_v30  ;;  %v2772_v46 = vmin.f32 %v2756_v58, 10000.0 }
 0x199   : > { %v1629_v56 = vpop.f32.mrb[15].mxu1  ;;  %v2829_v2 = vmul.f32 1.442695, %v2813_v60  ;;  %v2814_v0 = vmul.f32 %v4858_v5, %v2783_v10  ;;  %3805 = vlog2.f32 %v2774_v54  ;;  %v3564_v19 = vadd.f32 %v3461_v12, %v4843_v53 }
 0x19a   : > { %3807 = vpow2.f32 %v2833_v55  ;;  %v2835_v33 = vmul.f32 1.442695, %v2816_v9  ;;  %v3559_v11 = vadd.f32 %v3558_v8, %v2702_v21  ;;  %v3532_v34 = vpop.f32.mrb[12].mxu0  ;;  %v2775_v35 = vmin.f32 %v2759_v51, 10000.0 }
 0x19b   : > { %v3798_v6 = vpop.eup %3797  ;;  %3809 = vpow2.f32 %v2829_v2  ;;  %v2831_v45 = vmul.f32 1.442695, %v2814_v0  ;;  %v3561_v63 = vadd.f32 %v3560_v40, %v3532_v34  ;;  %v2715_v13 = vpop.f32.mrb[13].mxu0  ;;  %v3566_v25 = vadd.f32 %v4843_v53, %v1629_v56 }
 0x19c   : > { %v3800_v49 = vpop.eup %3799  ;;  %3811 = vpow2.f32 %v2835_v33  ;;  %v2793_v23 = vmul.f32 0.6931472, %v3798_v6  ;;  %v2757_v15 = vmax.f32 %v3559_v11, 1e-06  ;;  %v3563_v52 = vadd.f32 %v3562_v28, %v2715_v13  ;;  %v3533_v20 = vpop.f32.mrb[14].mxu0 }
 0x19d   : > { %v3802_v31 = vpop.eup %3801  ;;  %3813 = vpow2.f32 %v2831_v45  ;;  %v2789_v18 = vmul.f32 0.6931472, %v3800_v49  ;;  %v2762_v27 = vmax.f32 %v3561_v63, 1e-06  ;;  %v3565_v41 = vadd.f32 %v3564_v19, %v3533_v20  ;;  %v2718_v57 = vpop.f32.mrb[15].mxu0 }
 0x19e   : > { %v3804_v32 = vpop.eup %3803  ;;  %v2819_v3 = vmul.f32 %v4858_v5, %v2793_v23  ;;  %v2795_v14 = vmul.f32 0.6931472, %v3802_v31  ;;  %3815 = vlog2.f32 %v2772_v46  ;;  %v2773_v42 = vmin.f32 %v2757_v15, 10000.0 }
 0x19f   : > { %v2817_v59 = vmul.f32 %v4858_v5, %v2789_v18  ;;  %v2791_v26 = vmul.f32 0.6931472, %v3804_v32  ;;  %3817 = vlog2.f32 %v2775_v35  ;;  %v2778_v50 = vmin.f32 %v2762_v27, 10000.0 }
 0x1a0   : > { %v2841_v44 = vmul.f32 1.442695, %v2819_v3  ;;  %3819 = vlog2.f32 %v2773_v42  ;;  %v2760_v1 = vmax.f32 %v3563_v52, 1e-06  ;;  %v2820_v47 = vmul.f32 %v4858_v5, %v2795_v14 }
 0x1a1   : > { %v2837_v37 = vmul.f32 1.442695, %v2817_v59  ;;  %v2818_v29 = vmul.f32 %v4858_v5, %v2791_v26  ;;  %v2763_v39 = vmax.f32 %v3565_v41, 1e-06  ;;  %3821 = vlog2.f32 %v2778_v50 }
 0x1a2   : > { %v2776_v4 = vmin.f32 %v2760_v1, 10000.0  ;;  %v3567_v16 = vadd.f32 %v3566_v25, %v2718_v57  ;;  %v2843_v53 = vmul.f32 1.442695, %v2820_v47 }
 0x1a3   : > { %v3806_v36 = vpop.eup %3805  ;;  %3823 = vpow2.f32 %v2837_v37  ;;  %v2839_v61 = vmul.f32 1.442695, %v2818_v29  ;;  %v2779_v17 = vmin.f32 %v2763_v39, 10000.0 }
 0x1a4   : > { %v3808_v62 = vpop.eup %3807  ;;  %3825 = vpow2.f32 %v2841_v44  ;;  %v2761_v43 = vmax.f32 %v3567_v16, 1e-06  ;;  %v2801_v38 = vmul.f32 0.6931472, %v3806_v36 }
 0x1a5   : > { %v3810_v7 = vpop.eup %3809  ;;  %3827 = vpow2.f32 %v2839_v61 }
 0x1a6   : > { %v3812_v22 = vpop.eup %3811  ;;  %3829 = vlog2.f32 %v2776_v4  ;;  %v2777_v21 = vmin.f32 %v2761_v43, 10000.0  ;;  %v2823_v54 = vmul.f32 %v4858_v5, %v2801_v38  ;;  %v2861_v38 = vld [vmem:[#allocation2] sm:$0x1] }
 0x1a7   : > { %v3814_v48 = vpop.eup %3813  ;;  %3831 = vlog2.f32 %v2779_v17 }
 0x1a8   : > { %v3816_v24 = vpop.eup %3815  ;;  %v2862_v8 = vadd.f32 %v3814_v48, %v3810_v7  ;;  %3833 = vlog2.f32 %v2777_v21  ;;  %v2849_v11 = vmul.f32 1.442695, %v2823_v54 }
 0x1a9   : > { %v3818_v30 = vpop.eup %3817  ;;  %3835 = vpow2.f32 %v2843_v53  ;;  %v2797_v58 = vmul.f32 0.6931472, %v3816_v24 }
 0x1aa   : > { %v3820_v60 = vpop.eup %3819  ;;  %v2863_v10 = vadd.f32 %v3808_v62, %v2862_v8  ;;  %v2803_v40 = vmul.f32 0.6931472, %v3818_v30 }
 0x1ab   : > { %v2821_v12 = vmul.f32 %v4858_v5, %v2797_v58  ;;  %v2799_v55 = vmul.f32 0.6931472, %v3820_v60  ;;  %v3822_v9 = vpop.eup %3821 }
 0x1ac   : > { %v2864_v28 = vadd.f32 %v3812_v22, %v2863_v10  ;;  %v2824_v2 = vmul.f32 %v4858_v5, %v2803_v40  ;;  %v2809_v6 = vmul.f32 0.6931472, %v3822_v9  ;;  %v2899_v9 = vlaneseq (!%p3287_p1) }
 0x1ad   : > { %v3824_v46 = vpop.eup %3823  ;;  %v2845_v56 = vmul.f32 1.442695, %v2821_v12  ;;  %v2822_v0 = vmul.f32 %v4858_v5, %v2799_v55 }
 0x1ae   : > { %v3826_v51 = vpop.eup %3825  ;;  %v2865_v33 = vadd.f32 %v3824_v46, %v2864_v28  ;;  %v2851_v13 = vmul.f32 1.442695, %v2824_v2  ;;  %v2827_v31 = vmul.f32 %v4858_v5, %v2809_v6  ;;  %v2900_v28 = vand.u32 (!%p3287_p1), 127, %v2899_v9 }
 0x1af   : > { %v3828_v19 = vpop.eup %3827  ;;  %3837 = vpow2.f32 %v2845_v56  ;;  %v2847_v34 = vmul.f32 1.442695, %v2822_v0 }
 0x1b0   : > { %v3830_v45 = vpop.eup %3829  ;;  %v2866_v35 = vadd.f32 %v3828_v19, %v2865_v33  ;;  %v2857_v14 = vmul.f32 1.442695, %v2827_v31  ;;  %vm2901_vm8 = vcmp.lt.s32.totalorder (!%p3287_p1), %v2900_v28, 32 }
 0x1b1   : > { %v3832_v63 = vpop.eup %3831  ;;  %3839 = vpow2.f32 %v2847_v34  ;;  %v2805_v49 = vmul.f32 0.6931472, %v3830_v45 }
 0x1b2   : > { %v3834_v23 = vpop.eup %3833  ;;  %v2867_v15 = vadd.f32 %v3826_v51, %v2866_v35  ;;  %v2811_v52 = vmul.f32 0.6931472, %v3832_v63  ;;  %3841 = vpow2.f32 %v2849_v11 }
 0x1b3   : > { %v3836_v20 = vpop.eup %3835  ;;  %v2825_v18 = vmul.f32 %v4858_v5, %v2805_v49  ;;  %v2807_v27 = vmul.f32 0.6931472, %v3834_v23  ;;  %3843 = vpow2.f32 %v2851_v13 }
 0x1b4   : > { %v2868_v41 = vadd.f32 %v3836_v20, %v2867_v15  ;;  %v2828_v32 = vmul.f32 %v4858_v5, %v2811_v52 }
 0x1b5   : > { %v2853_v57 = vmul.f32 1.442695, %v2825_v18  ;;  %v2826_v3 = vmul.f32 %v4858_v5, %v2807_v27 }
 0x1b6   : > { %v2859_v26 = vmul.f32 1.442695, %v2828_v32 }
 0x1b7   : > { %3845 = vpow2.f32 %v2853_v57  ;;  %v2855_v42 = vmul.f32 1.442695, %v2826_v3 }
 0x1b9   : > { %v3838_v59 = vpop.eup %3837  ;;  %3847 = vpow2.f32 %v2855_v42 }
 0x1ba   : > { %v2869_v50 = vadd.f32 %v3838_v59, %v2868_v41  ;;  %3849 = vpow2.f32 %v2857_v14 }
 0x1bb   : > { %v3840_v44 = vpop.eup %3839  ;;  %3851 = vpow2.f32 %v2859_v26 }
 0x1bc   : > { %v2870_v25 = vadd.f32 %v3840_v44, %v2869_v50  ;;  %v3842_v1 = vpop.eup %3841  ;;  %3855 = vrcp.f32 (!%p3287_p1), %v4858_v5 }
 0x1bd   : > { %v3844_v47 = vpop.eup %3843 }
 0x1be   : > { %v2871_v37 = vadd.f32 %v3842_v1, %v2870_v25 }
 0x1c0   : > { %v2872_v29 = vadd.f32 %v3844_v47, %v2871_v37 }
 0x1c1   : > { %v3846_v39 = vpop.eup %3845 }
 0x1c2   : > { %v2873_v4 = vadd.f32 %v3846_v39, %v2872_v29 }
 0x1c3   : > { %v3848_v16 = vpop.eup %3847 }
 0x1c4   : > { %v2874_v36 = vadd.f32 %v3848_v16, %v2873_v4  ;;  %v3850_v61 = vpop.eup %3849 }
 0x1c5   : > { %v3852_v62 = vpop.eup %3851 }
 0x1c6   : > { %v2875_v17 = vadd.f32 %v3850_v61, %v2874_v36  ;;  %v3856_v10 = vpop.eup (!%p3287_p1), %3855 }
 0x1c8   : > { %v2876_v43 = vadd.f32 %v3852_v62, %v2875_v17 }
 0x1ca   : > { %v2877_v7 = vrot.slane %v2876_v43, 4 }
 0x1cc   : > { %v2878_v53 = vadd.f32 %v2877_v7, %v2876_v43 }
 0x1ce   : > { %v2879_v22 = vrot.slane %v2878_v53, 2 }
 0x1d0   : > { %v2880_v21 = vadd.f32 %v2879_v22, %v2878_v53 }
 0x1d2   : > { %v2881_v48 = vrot.slane %v2880_v21, 1  ;;  %2888 = sbr.rel (%p3287_p1) target bundleno = 691 (0x2b3), region = 44 }
 0x1d4   : > { %v2882_v24 = vadd.f32 %v2881_v48, %v2880_v21 }
 0x1d6   : > { %v2883_v8 = vadd.f32 %v2882_v24, %v2861_v38 }
 0x1d8   : > { %2884 = vst [vmem:[#allocation2] sm:$0x1] %v2883_v8 }
 0x1df   : > { %v2889_v30 = vld [vmem:[#allocation2] sm:$0x1] }
 0x1e0   : > { %v2890_v58 = vmul.f32 0.00390625, %v2889_v30 }
 0x1e2   : > { %v2891_v60 = vmax.f32 %v2890_v58, 1e-35 }
 0x1e4   : > { %3857 = vlog2.f32 %v2891_v60 }
 0x1ee   : > { %v3858_v40 = vpop.eup %3857 }
 0x1ef   : > { %v2893_v54 = vmul.f32 0.6931472, %v3858_v40 }
 0x1f1   : > { %v2895_v12 = vmul.f32 %v3856_v10, %v2893_v54 }
 0x1f3   : > { %v2896_v55 = vmul.f32 1.442695, %v2895_v12 }
 0x1f5   : > { %3859 = vpow2.f32 %v2896_v55 }
 0x1ff   : > { %v3860_v46 = vpop.eup %3859 }
 0x200   : > { %v2898_v56 = vand.u32 2147483647, %v3860_v46 }
 0x202   : > { %v2902_v2 = vsel %vm2901_vm8, %v2898_v56, 0.0 }
 0x203   : > { %v2903_v0 = vmul.f32 %v2902_v2, %v2902_v2 }
 0x205   : > { %v2905_v51 = vsel %vm2904_vm9, %v2903_v0, 0.0 }
 0x206   : > { %2906 = vadd.xlane.f32.xlu0 %v2905_v51 }
 0x293   : > { %v2907_v33 = vpop.xlane.xlu0 %2906 }
 0x294   : > { %v2908_v5 = vadd.f32 1e-10, %v2907_v33 }
 0x296   : > { %3861 = vrsqrt.f32 %v2908_v5  ;;  %vm2911_vm10 = vcmp.eq.f32.partialorder %v2908_v5, inf  ;;  %v2914_v34 = vand.u32 2147483648, %v2908_v5  ;;  %vm2913_vm11 = vcmp.eq.f32.partialorder %v2908_v5, 0.0 }
 0x2a0   : > { %v3862_v19 = vpop.eup %3861 }
 0x2a1   : > { %v2910_v11 = vmul.f32 %v3862_v19, %v2908_v5 }
 0x2a3   : > { %v2912_v6 = vsel %vm2911_vm10, %v2908_v5, %v2910_v11 }
 0x2a4   : > { %v2915_v45 = vsel %vm2913_vm11, %v2914_v34, %v2912_v6 }
 0x2a5   : > { %3863 = vrcp.f32 %v2915_v45 }
 0x2af   : > { %v3864_v35 = vpop.eup %3863 }
 0x2b0   : > { %v2917_v63 = vmul.f32 %v3864_v35, %v2902_v2 }
 0x2b2   : > { %2918 = vst [vmem:[%s4073_s0] sm:$0x1] %v2917_v63 }
 0x2b3 PF: > { %s3288_s20 = sshll.u32 %s3947_s21, 4  ;;  %s2932_s10 = sshll.u32 %s4073_s0, 4  ;;  %s2933_s10 = int_to_ptr.vmem [resolvable:$true] %s2932_s10 }
 0x2b4   : > { %s4889_s9 = scalar_lea.hbm %s4943_s4, %s3288_s20  ;;  %s2920_s11 = scalar_lea.sflag [#allocation5], %s211_s7 }
 0x2b5   : > { %s3865_s12 = scalar_lea.vmem %s2933_s10, 16  ;;  %s3963_s13 = smov [#allocation4]  }
 0x2b6   : > { %p3866_p2 = scmp.ne.s32.totalorder %s2933_s10, %s3865_s12  ;;  %s3869_s16 = sshll.u32 %s3963_s13, 4  ;;  %s3870_s16 = int_to_ptr.vmem [resolvable:$false] %s3869_s16 }
 0x2b7   : > { %s3871_s14 = scalar_lea.vmem %s3870_s16, 32  ;;  %p3872_p6 = scmp.lt.s32.totalorder %s2933_s10, %s3870_s16 }
 0x2b8   : > { %p3867_p4 = pnand %p3866_p2, %p4041_p3  ;;  %p3873_p7 = scmp.lt.s32.totalorder %s3871_s14, %s3865_s12 }
 0x2ba   : > { %p3868_p5 = pneg %p3867_p4  ;;  %p3874_p8 = por %p3873_p7, %p3872_p6 }
 0x2bc   : > { %p3875_p10 = pnand %p3874_p8, %p3868_p5 }
 0x2be   : > { %3878 = shalt.err (!%p3875_p10)
}
 0x2bf   : > { %s3879_s21 = scalar_lea.hbm %s4889_s9, 16  ;;  %s3883_s15 = scalar_lea.hbm %s4943_s4, 32 }
 0x2c0   : > { %p3880_p11 = scmp.ne.s32.totalorder %s4889_s9, %s3879_s21  ;;  %p3884_p0 = scmp.lt.u32.totalorder %s4889_s9, %s4943_s4 }
 0x2c1   : > { %p3885_p1 = scmp.lt.u32.totalorder %s3883_s15, %s3879_s21  ;;  %p3887_p4 = scmp.lt.u32.totalorder %s3879_s21, %s4889_s9 }
 0x2c2   : > { %p3881_p12 = pnand %p3880_p11, %p4041_p3 }
 0x2c3   : > { %p3886_p2 = por %p3885_p1, %p3884_p0 }
 0x2c4   : > { %p3882_p13 = pneg %p3881_p12 }
 0x2c5   : > { %p3888_p5 = por %p3887_p4, %p3886_p2 }
 0x2c7   : > { %p3889_p6 = pnand %p3888_p5, %p3882_p13 }
 0x2c9   : > { %3892 = shalt.err (!%p3889_p6)
}
 0x2ca   : > { %3692 = dma.vmem_to_hbm [thread:$0]  (%p4041_p3), %s2933_s10, 16, %s4889_s9, %s2920_s11  }
 0x2cb PF: > { %p3698_p7 = scmp.ge.s32.totalorder %s3959_s24, 2  ;;  %s2944_s20 = sand.u32 1, %s3931_s17  }
 0x2cc   : > { %s2945_s5 = scalar_lea.sflag [#allocation5], %s2944_s20 }
 0x2cd   : > { %p3695_p8 = pnand %p3698_p7, %p4051_p9 }
 0x2cf   : > { %3926 = dma.done.wait (!%p3695_p8), %s2945_s5, 16  }
 0x2d0   : > { %3928 = vsyncadd (!%p3695_p8), %s2945_s5, 4294967280  ;;  %s18_s24 = sadd.s32 1, %s3959_s24   ;;  %s4950_s17 = smov %s3935_s18 }
 0x2d1   : > { %p15_p10 = scmp.ge.s32.totalorder %s18_s24, 6   ;;  %s4951_s18 = smov %s3939_s19 }
 0x2d2   : > { %s4952_s19 = smov %s4059_s6  ;;  %s4953_s20 = smov %s3951_s22 }
 0x2d3   : > { %s4954_s21 = smov %s3955_s23  ;;  %s4955_s22 = smov %s4958_s26 }
 0x2d4   : > { %s4956_s23 = smov %s4962_s27  ;;  %17 = sbr.rel (!%p15_p10) target bundleno = 7 (0x7), region = 89 }
 0x2db   :  { %2949 = vsyncpa [#allocation5], 1 }
 0x2dc   :  { %2951 = vsyncpa [#allocation5 + $0x1], 1 }

</bundles_post_ra>
